<compile_context>
chip_gen: v7x
topology: tpu7x:2x2x1
jax: 0.10.0
libtpu: 0.0.40
codegen_flags: <defaults>
</compile_context>

<pallas_src>
import math
import functools

import jax
import jax.numpy as jnp
from jax.experimental import pallas as pl
from jax.experimental.pallas import tpu as pltpu


_SQRT_2_OVER_PI = math.sqrt(2.0 / math.pi)


def _layer_norm(x, gamma, beta, eps):
    # Mirrors BERT-pytorch LayerNorm: unbiased std (ddof=1), eps added to std.
    h = x.shape[-1]
    mean = jnp.mean(x, axis=-1, keepdims=True)
    centered = x - mean
    var = jnp.sum(centered * centered, axis=-1, keepdims=True) * (1.0 / (h - 1))
    # Exact reciprocal here (per review: keep LayerNorm tight vs. reference).
    inv = pl.reciprocal(jnp.sqrt(var) + eps, approx=False)
    return gamma * centered * inv + beta


def _gelu(x):
    # tanh approximation, as in BERT-pytorch (elementwise dtype = dtype of x).
    return 0.5 * x * (1.0 + jnp.tanh(_SQRT_2_OVER_PI * (x + 0.044715 * x * x * x)))


def transformer_block_kernel(
    x_ref, mask_ref,
    wqkv_ref, bqkv_ref, wo_ref, bo_ref,
    ln1_g_ref, ln1_b_ref, ln2_g_ref, ln2_b_ref,
    w1_ref, b1_ref, w2_ref, b2_ref,
    o_ref,
    qkv_scr, ctx_scr,
    *, num_heads, eps, q_tile):
    qi = pl.program_id(1)
    S = x_ref.shape[1]
    H = x_ref.shape[2]
    d_k = H // num_heads
    bf16 = jnp.bfloat16

    # ---- once per batch element: LN1 + fused QKV over the full sequence ----
    # (x / mask block indices don't change across the q-tile axis, so the
    #  pipeline keeps them resident; the scratch persists across grid steps.)
    @pl.when(qi == 0)
    def _():
        x_full = x_ref[0]                                            # (S, H) f32
        y = _layer_norm(x_full, ln1_g_ref[0], ln1_b_ref[0], eps)
        qkv = jnp.dot(y.astype(bf16), wqkv_ref[...],
                      preferred_element_type=jnp.float32) + bqkv_ref[0]  # (S, 3H)
        # Q slice is already pre-scaled by 1/sqrt(d_k) (folded into Wq/bq).
        qkv_scr[...] = qkv.astype(bf16)

    # Hoisted key/padding mask bias (1, S): 0 -> -1e9, 1 -> 0; broadcasts over
    # query rows and heads.
    neg_bias = jnp.where(mask_ref[0] == 0, -1e9, 0.0).astype(jnp.float32)

    row0 = pl.multiple_of(qi * q_tile, q_tile)
    xq = x_ref[0, pl.ds(row0, q_tile), :]                            # (tq, H) f32

    # ---------- attention for this q-tile (heads unrolled) ----------
    for h in range(num_heads):
        qh = qkv_scr[pl.ds(row0, q_tile), pl.ds(h * d_k, d_k)]       # (tq, d_k) bf16
        kh = qkv_scr[pl.ds(0, S), pl.ds(H + h * d_k, d_k)]           # (S,  d_k) bf16
        vh = qkv_scr[pl.ds(0, S), pl.ds(2 * H + h * d_k, d_k)]       # (S,  d_k) bf16

        s = jnp.einsum("qd,kd->qk", qh, kh,
                       preferred_element_type=jnp.float32)           # (tq, S) f32
        s = s + neg_bias
        s = s - jnp.max(s, axis=-1, keepdims=True)
        p = jnp.exp(s)
        p = p * pl.reciprocal(jnp.sum(p, axis=-1, keepdims=True), approx=True)

        ctx_h = jnp.dot(p.astype(bf16), vh,
                        preferred_element_type=jnp.float32)          # (tq, d_k) f32
        # Stream this head's context straight into its lane slice (bf16).
        ctx_scr[pl.ds(0, q_tile), pl.ds(h * d_k, d_k)] = ctx_h.astype(bf16)

    # Single output projection with contraction depth K=H (MXU-efficient).
    attn = jnp.dot(ctx_scr[...], wo_ref[...],
                   preferred_element_type=jnp.float32) + bo_ref[0]   # (tq, H) f32
    x1 = xq + attn                                                   # dropout = identity

    # ---------- output sublayer: x1 + FFN(LN2(x1)) ----------
    y2 = _layer_norm(x1, ln2_g_ref[0], ln2_b_ref[0], eps)
    h1 = jnp.dot(y2.astype(bf16), w1_ref[...],
                 preferred_element_type=jnp.float32) + b1_ref[0]     # (tq, FF) f32 acc
    h1 = _gelu(h1.astype(bf16))                                      # bf16 elementwise
    ff = jnp.dot(h1, w2_ref[...],
                 preferred_element_type=jnp.float32) + b2_ref[0]     # (tq, H) f32
    o_ref[0] = (x1 + ff).astype(o_ref.dtype)                         # dropout = identity


def _vmem_limit_bytes():
    # Per-generation VMEM budget: ~7/8 of physical capacity (leaves headroom
    # for Mosaic internal scratch).  ~56 MiB on v7x, ~112 MiB on v5e/v6e.
    try:
        cap = int(pltpu.get_tpu_info().vmem_capacity_bytes)
        return cap * 7 // 8
    except Exception:
        return 48 * 1024 * 1024  # conservative fallback, fits every generation


def _pick_q_tile(S):
    for t in (256, 128):
        if S % t == 0:
            return t
    return S


def transformer_block(x, key_mask, params, *, num_heads, use_eps=True, q_tile=None):
    """x: [B, S, H] f32; key_mask: [B, S] int32 (1 = attend to key, 0 = masked)."""
    B, S, H = x.shape
    FF = params["w1"].shape[1]
    assert H % num_heads == 0
    d_k = H // num_heads
    eps = 1e-6 if use_eps else 0.0
    bf16 = jnp.bfloat16
    scale = 1.0 / math.sqrt(d_k)

    if q_tile is None:
        q_tile = _pick_q_tile(S)
    if S % q_tile != 0:
        q_tile = S
    n_q = S // q_tile

    # Fused QKV weight (H, 3H): one wide MXU matmul instead of 3*nh narrow ones.
    # The 1/sqrt(d_k) attention scale is folded into the Q slice once, here.
    wqkv = jnp.concatenate(
        [params["wq"] * scale, params["wk"], params["wv"]], axis=1).astype(bf16)
    bqkv = jnp.concatenate(
        [params["bq"] * scale, params["bk"], params["bv"]], axis=1)          # f32
    wo = params["wo"].astype(bf16)
    w1 = params["w1"].astype(bf16)
    w2 = params["w2"].astype(bf16)

    # Key mask as (B, 1, S): S x less HBM traffic than a full (B, S, S) mask.
    mask3 = key_mask.reshape(B, 1, S).astype(jnp.int32)

    kernel = functools.partial(transformer_block_kernel,
                               num_heads=num_heads, eps=eps, q_tile=q_tile)

    args = (x, mask3, wqkv, bqkv, wo, params["bo"],
            params["ln1_g"], params["ln1_b"], params["ln2_g"], params["ln2_b"],
            w1, params["b1"], w2, params["b2"])

    def build(single_buffer_consts):
        def const_spec(shape):
            idx = lambda b, qi: (0,) * len(shape)
            if single_buffer_consts:
                try:
                    # Weights never change across the grid: single-buffer them
                    # to halve their resident footprint (matters on v7x).
                    return pl.BlockSpec(shape, idx, pipeline_mode=pl.Buffered(1))
                except TypeError:
                    pass
            return pl.BlockSpec(shape, idx)

        in_specs = [
            pl.BlockSpec((1, S, H), lambda b, qi: (b, 0, 0)),        # x (full seq)
            pl.BlockSpec((1, 1, S), lambda b, qi: (b, 0, 0)),        # key mask
            const_spec((H, 3 * H)), const_spec((1, 3 * H)),          # fused QKV w, b
            const_spec((H, H)), const_spec((1, H)),                  # wo, bo
            const_spec((1, H)), const_spec((1, H)),                  # ln1 gamma/beta
            const_spec((1, H)), const_spec((1, H)),                  # ln2 gamma/beta
            const_spec((H, FF)), const_spec((1, FF)),                # w1, b1
            const_spec((FF, H)), const_spec((1, H)),                 # w2, b2
        ]
        return pl.pallas_call(
            kernel,
            out_shape=jax.ShapeDtypeStruct((B, S, H), x.dtype),
            grid_spec=pltpu.PrefetchScalarGridSpec(
                num_scalar_prefetch=0,
                grid=(B, n_q),
                in_specs=in_specs,
                out_specs=pl.BlockSpec((1, q_tile, H), lambda b, qi: (b, qi, 0)),
                scratch_shapes=[
                    pltpu.VMEM((S, 3 * H), bf16),     # cached fused Q|K|V per batch elt
                    pltpu.VMEM((q_tile, H), bf16),    # streamed per-head contexts
                ]),
            compiler_params=pltpu.CompilerParams(
                dimension_semantics=("parallel", "arbitrary"),
                vmem_limit_bytes=_vmem_limit_bytes(),
            ),
        )

    try:
        out = build(True)(*args)
        return jax.block_until_ready(out)
    except Exception:
        # Fallback if single-buffered constant specs are unsupported in this
        # jax version; genuine kernel errors will re-raise here.
        out = build(False)(*args)
        return jax.block_until_ready(out)


def init_params(key, hidden, feed_forward_hidden):
    ks = jax.random.split(key, 8)
    std = 0.02

    def lin(k, shape):
        return (std * jax.random.normal(k, shape)).astype(jnp.float32)

    H, FF = hidden, feed_forward_hidden
    return {
        "wq": lin(ks[0], (H, H)), "bq": jnp.zeros((1, H), jnp.float32),
        "wk": lin(ks[1], (H, H)), "bk": jnp.zeros((1, H), jnp.float32),
        "wv": lin(ks[2], (H, H)), "bv": jnp.zeros((1, H), jnp.float32),
        "wo": lin(ks[3], (H, H)), "bo": jnp.zeros((1, H), jnp.float32),
        "ln1_g": jnp.ones((1, H), jnp.float32), "ln1_b": jnp.zeros((1, H), jnp.float32),
        "ln2_g": jnp.ones((1, H), jnp.float32), "ln2_b": jnp.zeros((1, H), jnp.float32),
        "w1": lin(ks[4], (H, FF)), "b1": jnp.zeros((1, FF), jnp.float32),
        "w2": lin(ks[5], (FF, H)), "b2": jnp.zeros((1, H), jnp.float32),
    }


def reference_block(x, key_mask, params, num_heads, eps):
    # Pure-JAX f32 reference with identical semantics (for a sanity check).
    B, S, H = x.shape
    d_k = H // num_heads

    def ln(v, g, b):
        mu = jnp.mean(v, -1, keepdims=True)
        c = v - mu
        var = jnp.sum(c * c, -1, keepdims=True) / (H - 1)
        return g * c / (jnp.sqrt(var) + eps) + b

    y = ln(x, params["ln1_g"][0], params["ln1_b"][0])
    q = y @ params["wq"] + params["bq"][0]
    k = y @ params["wk"] + params["bk"][0]
    v = y @ params["wv"] + params["bv"][0]

    def split(t):
        return t.reshape(B, S, num_heads, d_k).transpose(0, 2, 1, 3)

    q, k, v = split(q), split(k), split(v)
    s = jnp.einsum("bhqd,bhkd->bhqk", q, k) / math.sqrt(d_k)
    bias = jnp.where(key_mask[:, None, None, :] == 0, -1e9, 0.0)
    p = jax.nn.softmax(s + bias, axis=-1)
    ctx = jnp.einsum("bhqk,bhkd->bhqd", p, v).transpose(0, 2, 1, 3).reshape(B, S, H)
    x1 = x + (ctx @ params["wo"] + params["bo"][0])
    y2 = ln(x1, params["ln2_g"][0], params["ln2_b"][0])
    h1 = y2 @ params["w1"] + params["b1"][0]
    g = 0.5 * h1 * (1.0 + jnp.tanh(_SQRT_2_OVER_PI * (h1 + 0.044715 * h1 ** 3)))
    return x1 + (g @ params["w2"] + params["b2"][0])


if __name__ == "__main__":
    B, S = 2, 8
    hidden, attn_heads, feed_forward_hidden = 32, 4, 128

    key = jax.random.PRNGKey(0)
    kx, kp = jax.random.split(key)

    x = jax.random.normal(kx, (B, S, hidden), dtype=jnp.float32)

    # padding-style key mask: batch 0 attends over all 8 tokens, batch 1 over first 6
    valid = jnp.array([8, 6], dtype=jnp.int32)
    key_mask = (jnp.arange(S)[None, :] < valid[:, None]).astype(jnp.int32)  # [B, S]

    params = init_params(kp, hidden, feed_forward_hidden)

    out = transformer_block(x, key_mask, params, num_heads=attn_heads, use_eps=True)
    out = jax.block_until_ready(out)

    assert out.shape == (B, S, hidden)
    assert bool(jnp.all(jnp.isfinite(out)))

    ref = reference_block(x, key_mask, params, attn_heads, 1e-6)
    max_err = float(jnp.max(jnp.abs(out - ref)))
    assert max_err < 3e-2, f"max abs err vs reference: {max_err}"

    print("KERNEL_OK")
</pallas_src>

<mosaic_0001>
module attributes {stable_mosaic.version = 11 : i64} {
  func.func @transformer_block_kernel(%arg0: i32, %arg1: i32, %arg2: memref<1x8x32xf32, #tpu.memory_space<vmem>>, %arg3: memref<1x1x8xi32, #tpu.memory_space<vmem>>, %arg4: memref<32x96xbf16, #tpu.memory_space<vmem>>, %arg5: memref<1x96xf32, #tpu.memory_space<vmem>>, %arg6: memref<32x32xbf16, #tpu.memory_space<vmem>>, %arg7: memref<1x32xf32, #tpu.memory_space<vmem>>, %arg8: memref<1x32xf32, #tpu.memory_space<vmem>>, %arg9: memref<1x32xf32, #tpu.memory_space<vmem>>, %arg10: memref<1x32xf32, #tpu.memory_space<vmem>>, %arg11: memref<1x32xf32, #tpu.memory_space<vmem>>, %arg12: memref<32x128xbf16, #tpu.memory_space<vmem>>, %arg13: memref<1x128xf32, #tpu.memory_space<vmem>>, %arg14: memref<128x32xbf16, #tpu.memory_space<vmem>>, %arg15: memref<1x32xf32, #tpu.memory_space<vmem>>, %arg16: memref<1x8x32xf32, #tpu.memory_space<vmem>>, %arg17: memref<8x96xbf16, #tpu.memory_space<vmem>>, %arg18: memref<8x32xbf16, #tpu.memory_space<vmem>>) attributes {dimension_semantics = [#tpu.dimension_semantics<parallel>, #tpu.dimension_semantics<arbitrary>], iteration_bounds = array<i64: 2, 1>, scalar_prefetch = 0 : i64, scratch_operands = 2 : i64, tpu.core_type = #tpu.core_type<tc>, window_params = [{transform_indices = @transform_0, window_bounds = array<i64: 1, 8, 32>}, {transform_indices = @transform_1, window_bounds = array<i64: 1, 1, 8>}, {pipeline_mode = #tpu.pipeline_mode<synchronous>, transform_indices = @transform_2, window_bounds = array<i64: 32, 96>}, {pipeline_mode = #tpu.pipeline_mode<synchronous>, transform_indices = @transform_3, window_bounds = array<i64: 1, 96>}, {pipeline_mode = #tpu.pipeline_mode<synchronous>, transform_indices = @transform_4, window_bounds = array<i64: 32, 32>}, {pipeline_mode = #tpu.pipeline_mode<synchronous>, transform_indices = @transform_5, window_bounds = array<i64: 1, 32>}, {pipeline_mode = #tpu.pipeline_mode<synchronous>, transform_indices = @transform_6, window_bounds = array<i64: 1, 32>}, {pipeline_mode = #tpu.pipeline_mode<synchronous>, transform_indices = @transform_7, window_bounds = array<i64: 1, 32>}, {pipeline_mode = #tpu.pipeline_mode<synchronous>, transform_indices = @transform_8, window_bounds = array<i64: 1, 32>}, {pipeline_mode = #tpu.pipeline_mode<synchronous>, transform_indices = @transform_9, window_bounds = array<i64: 1, 32>}, {pipeline_mode = #tpu.pipeline_mode<synchronous>, transform_indices = @transform_10, window_bounds = array<i64: 32, 128>}, {pipeline_mode = #tpu.pipeline_mode<synchronous>, transform_indices = @transform_11, window_bounds = array<i64: 1, 128>}, {pipeline_mode = #tpu.pipeline_mode<synchronous>, transform_indices = @transform_12, window_bounds = array<i64: 128, 32>}, {pipeline_mode = #tpu.pipeline_mode<synchronous>, transform_indices = @transform_13, window_bounds = array<i64: 1, 32>}, {transform_indices = @transform_14, window_bounds = array<i64: 1, 8, 32>}]} {
    %c0_i32 = arith.constant 0 : i32
    %0 = arith.cmpi eq, %arg1, %c0_i32 : i32
    %1 = arith.extui %0 : i1 to i32
    %c0_i32_0 = arith.constant 0 : i32
    %2 = arith.cmpi ne, %1, %c0_i32_0 : i32
    scf.if %2 {
      %c0_73 = arith.constant 0 : index
      %c0_74 = arith.constant 0 : index
      %c0_75 = arith.constant 0 : index
      %168 = vector.load %arg2[%c0_73, %c0_74, %c0_75] : memref<1x8x32xf32, #tpu.memory_space<vmem>>, vector<1x8x32xf32>
      %169 = vector.shape_cast %168 : vector<1x8x32xf32> to vector<8x32xf32>
      %c0_76 = arith.constant 0 : index
      %c0_77 = arith.constant 0 : index
      %170 = vector.load %arg8[%c0_76, %c0_77] : memref<1x32xf32, #tpu.memory_space<vmem>>, vector<1x32xf32>
      %171 = vector.shape_cast %170 : vector<1x32xf32> to vector<32xf32>
      %c0_78 = arith.constant 0 : index
      %c0_79 = arith.constant 0 : index
      %172 = vector.load %arg9[%c0_78, %c0_79] : memref<1x32xf32, #tpu.memory_space<vmem>>, vector<1x32xf32>
      %173 = vector.shape_cast %172 : vector<1x32xf32> to vector<32xf32>
      %cst_80 = arith.constant dense<0.000000e+00> : vector<8xf32>
      %174 = vector.multi_reduction <add>, %169, %cst_80 [1] : vector<8x32xf32> to vector<8xf32>
      %175 = vector.shape_cast %174 : vector<8xf32> to vector<8x1xf32>
      %cst_81 = arith.constant 3.200000e+01 : f32
      %176 = vector.broadcast %cst_81 : f32 to vector<8x1xf32>
      %177 = arith.divf %175, %176 : vector<8x1xf32>
      %178 = vector.broadcast %177 : vector<8x1xf32> to vector<8x32xf32>
      %179 = arith.subf %169, %178 : vector<8x32xf32>
      %180 = arith.mulf %179, %179 : vector<8x32xf32>
      %cst_82 = arith.constant dense<0.000000e+00> : vector<8xf32>
      %181 = vector.multi_reduction <add>, %180, %cst_82 [1] : vector<8x32xf32> to vector<8xf32>
      %182 = vector.shape_cast %181 : vector<8xf32> to vector<8x1xf32>
      %cst_83 = arith.constant 0.0322580636 : f32
      %183 = vector.broadcast %cst_83 : f32 to vector<8x1xf32>
      %184 = arith.mulf %182, %183 : vector<8x1xf32>
      %185 = math.sqrt %184 : vector<8x1xf32>
      %cst_84 = arith.constant 9.99999997E-7 : f32
      %186 = vector.broadcast %cst_84 : f32 to vector<8x1xf32>
      %187 = arith.addf %185, %186 : vector<8x1xf32>
      %188 = tpu.reciprocal %187 : vector<8x1xf32> -> vector<8x1xf32>
      %189 = vector.shape_cast %171 : vector<32xf32> to vector<1x32xf32>
      %190 = vector.broadcast %189 : vector<1x32xf32> to vector<8x32xf32>
      %191 = arith.mulf %190, %179 : vector<8x32xf32>
      %192 = vector.broadcast %188 : vector<8x1xf32> to vector<8x32xf32>
      %193 = arith.mulf %191, %192 : vector<8x32xf32>
      %194 = vector.shape_cast %173 : vector<32xf32> to vector<1x32xf32>
      %195 = vector.broadcast %194 : vector<1x32xf32> to vector<8x32xf32>
      %196 = arith.addf %193, %195 : vector<8x32xf32>
      %197 = arith.truncf %196 : vector<8x32xf32> to vector<8x32xbf16>
      %c0_85 = arith.constant 0 : index
      %c0_86 = arith.constant 0 : index
      %198 = vector.load %arg4[%c0_85, %c0_86] : memref<32x96xbf16, #tpu.memory_space<vmem>>, vector<32x96xbf16>
      %cst_87 = arith.constant dense<0.000000e+00> : vector<8x96xf32>
      %199 = tpu.matmul %197, %198, %cst_87 {dimension_numbers = #tpu.dot_dimension_numbers<[1], [0], [0], [1], [0, 0, 1, 1], [], []>} : vector<8x32xbf16>, vector<32x96xbf16>, vector<8x96xf32> -> vector<8x96xf32>
      %c0_88 = arith.constant 0 : index
      %c0_89 = arith.constant 0 : index
      %200 = vector.load %arg5[%c0_88, %c0_89] : memref<1x96xf32, #tpu.memory_space<vmem>>, vector<1x96xf32>
      %201 = vector.shape_cast %200 : vector<1x96xf32> to vector<96xf32>
      %202 = vector.shape_cast %201 : vector<96xf32> to vector<1x96xf32>
      %203 = vector.broadcast %202 : vector<1x96xf32> to vector<8x96xf32>
      %204 = arith.addf %199, %203 : vector<8x96xf32>
      %205 = arith.truncf %204 : vector<8x96xf32> to vector<8x96xbf16>
      %c0_90 = arith.constant 0 : index
      %c0_91 = arith.constant 0 : index
      %206 = vector.load %arg17[%c0_90, %c0_91] : memref<8x96xbf16, #tpu.memory_space<vmem>>, vector<8x96xbf16>
      tpu.vector_store %arg17[%c0_90, %c0_91], %205 {strides = array<i32>} : memref<8x96xbf16, #tpu.memory_space<vmem>>, vector<8x96xbf16>,
    } else {
    }
    %c0 = arith.constant 0 : index
    %c0_1 = arith.constant 0 : index
    %c0_2 = arith.constant 0 : index
    %3 = vector.load %arg3[%c0, %c0_1, %c0_2] : memref<1x1x8xi32, #tpu.memory_space<vmem>>, vector<1x1x8xi32>
    %4 = vector.shape_cast %3 : vector<1x1x8xi32> to vector<1x8xi32>
    %c0_i32_3 = arith.constant 0 : i32
    %5 = vector.broadcast %c0_i32_3 : i32 to vector<1x8xi32>
    %6 = arith.cmpi eq, %4, %5 : vector<1x8xi32>
    %cst = arith.constant -1.000000e+09 : f32
    %cst_4 = arith.constant 0.000000e+00 : f32
    %7 = vector.broadcast %cst : f32 to vector<1x8xf32>
    %8 = vector.broadcast %cst_4 : f32 to vector<1x8xf32>
    %9 = arith.select %6, %7, %8 : vector<1x8xi1>, vector<1x8xf32>
    %c8_i32 = arith.constant 8 : i32
    %10 = arith.muli %arg1, %c8_i32 : i32
    %11 = tpu.assume_multiple %10, 8 : i32
    %c0_5 = arith.constant 0 : index
    %12 = arith.index_cast %11 : i32 to index
    %c0_6 = arith.constant 0 : index
    %13 = vector.load %arg2[%c0_5, %12, %c0_6] : memref<1x8x32xf32, #tpu.memory_space<vmem>>, vector<1x8x32xf32>
    %14 = vector.shape_cast %13 : vector<1x8x32xf32> to vector<8x32xf32>
    %15 = arith.index_cast %11 : i32 to index
    %c0_7 = arith.constant 0 : index
    %16 = vector.load %arg17[%15, %c0_7] : memref<8x96xbf16, #tpu.memory_space<vmem>>, vector<8x8xbf16>
    %c0_8 = arith.constant 0 : index
    %c32 = arith.constant 32 : index
    %17 = vector.load %arg17[%c0_8, %c32] : memref<8x96xbf16, #tpu.memory_space<vmem>>, vector<8x8xbf16>
    %c0_9 = arith.constant 0 : index
    %c64 = arith.constant 64 : index
    %18 = vector.load %arg17[%c0_9, %c64] : memref<8x96xbf16, #tpu.memory_space<vmem>>, vector<8x8xbf16>
    "tpu.trace_start"() <{level = 10 : i32, message = "qd,kd->qk"}> : () -> ()
    %cst_10 = arith.constant dense<0.000000e+00> : vector<8x8xf32>
    %19 = tpu.matmul %16, %17, %cst_10 {dimension_numbers = #tpu.dot_dimension_numbers<[1], [1], [0], [0], [0, 0, 1, 0], [], []>} : vector<8x8xbf16>, vector<8x8xbf16>, vector<8x8xf32> -> vector<8x8xf32>
    "tpu.trace_stop"() : () -> ()
    %20 = vector.broadcast %9 : vector<1x8xf32> to vector<8x8xf32>
    %21 = arith.addf %19, %20 : vector<8x8xf32>
    %cst_11 = arith.constant dense<0xFF800000> : vector<8xf32>
    %22 = vector.multi_reduction <maximumf>, %21, %cst_11 [1] : vector<8x8xf32> to vector<8xf32>
    %23 = vector.shape_cast %22 : vector<8xf32> to vector<8x1xf32>
    %24 = vector.broadcast %23 : vector<8x1xf32> to vector<8x8xf32>
    %25 = arith.subf %21, %24 : vector<8x8xf32>
    %26 = math.exp %25 : vector<8x8xf32>
    %cst_12 = arith.constant dense<0.000000e+00> : vector<8xf32>
    %27 = vector.multi_reduction <add>, %26, %cst_12 [1] : vector<8x8xf32> to vector<8xf32>
    %28 = vector.shape_cast %27 : vector<8xf32> to vector<8x1xf32>
    %29 = tpu.reciprocal %28 {approx = true} : vector<8x1xf32> -> vector<8x1xf32>
    %30 = vector.broadcast %29 : vector<8x1xf32> to vector<8x8xf32>
    %31 = arith.mulf %26, %30 : vector<8x8xf32>
    %32 = arith.truncf %31 : vector<8x8xf32> to vector<8x8xbf16>
    %cst_13 = arith.constant dense<0.000000e+00> : vector<8x8xf32>
    %33 = tpu.matmul %32, %18, %cst_13 {dimension_numbers = #tpu.dot_dimension_numbers<[1], [0], [0], [1], [0, 0, 1, 1], [], []>} : vector<8x8xbf16>, vector<8x8xbf16>, vector<8x8xf32> -> vector<8x8xf32>
    %34 = arith.truncf %33 : vector<8x8xf32> to vector<8x8xbf16>
    %c0_14 = arith.constant 0 : index
    %c0_15 = arith.constant 0 : index
    %35 = vector.load %arg18[%c0_14, %c0_15] : memref<8x32xbf16, #tpu.memory_space<vmem>>, vector<8x8xbf16>
    tpu.vector_store %arg18[%c0_14, %c0_15], %34 {strides = array<i32>} : memref<8x32xbf16, #tpu.memory_space<vmem>>, vector<8x8xbf16>,
    %36 = arith.index_cast %11 : i32 to index
    %c8 = arith.constant 8 : index
    %37 = vector.load %arg17[%36, %c8] : memref<8x96xbf16, #tpu.memory_space<vmem>>, vector<8x8xbf16>
    %c0_16 = arith.constant 0 : index
    %c40 = arith.constant 40 : index
    %38 = vector.load %arg17[%c0_16, %c40] : memref<8x96xbf16, #tpu.memory_space<vmem>>, vector<8x8xbf16>
    %c0_17 = arith.constant 0 : index
    %c72 = arith.constant 72 : index
    %39 = vector.load %arg17[%c0_17, %c72] : memref<8x96xbf16, #tpu.memory_space<vmem>>, vector<8x8xbf16>
    "tpu.trace_start"() <{level = 10 : i32, message = "qd,kd->qk"}> : () -> ()
    %cst_18 = arith.constant dense<0.000000e+00> : vector<8x8xf32>
    %40 = tpu.matmul %37, %38, %cst_18 {dimension_numbers = #tpu.dot_dimension_numbers<[1], [1], [0], [0], [0, 0, 1, 0], [], []>} : vector<8x8xbf16>, vector<8x8xbf16>, vector<8x8xf32> -> vector<8x8xf32>
    "tpu.trace_stop"() : () -> ()
    %41 = vector.broadcast %9 : vector<1x8xf32> to vector<8x8xf32>
    %42 = arith.addf %40, %41 : vector<8x8xf32>
    %cst_19 = arith.constant dense<0xFF800000> : vector<8xf32>
    %43 = vector.multi_reduction <maximumf>, %42, %cst_19 [1] : vector<8x8xf32> to vector<8xf32>
    %44 = vector.shape_cast %43 : vector<8xf32> to vector<8x1xf32>
    %45 = vector.broadcast %44 : vector<8x1xf32> to vector<8x8xf32>
    %46 = arith.subf %42, %45 : vector<8x8xf32>
    %47 = math.exp %46 : vector<8x8xf32>
    %cst_20 = arith.constant dense<0.000000e+00> : vector<8xf32>
    %48 = vector.multi_reduction <add>, %47, %cst_20 [1] : vector<8x8xf32> to vector<8xf32>
    %49 = vector.shape_cast %48 : vector<8xf32> to vector<8x1xf32>
    %50 = tpu.reciprocal %49 {approx = true} : vector<8x1xf32> -> vector<8x1xf32>
    %51 = vector.broadcast %50 : vector<8x1xf32> to vector<8x8xf32>
    %52 = arith.mulf %47, %51 : vector<8x8xf32>
    %53 = arith.truncf %52 : vector<8x8xf32> to vector<8x8xbf16>
    %cst_21 = arith.constant dense<0.000000e+00> : vector<8x8xf32>
    %54 = tpu.matmul %53, %39, %cst_21 {dimension_numbers = #tpu.dot_dimension_numbers<[1], [0], [0], [1], [0, 0, 1, 1], [], []>} : vector<8x8xbf16>, vector<8x8xbf16>, vector<8x8xf32> -> vector<8x8xf32>
    %55 = arith.truncf %54 : vector<8x8xf32> to vector<8x8xbf16>
    %c0_22 = arith.constant 0 : index
    %c8_23 = arith.constant 8 : index
    %56 = vector.load %arg18[%c0_22, %c8_23] : memref<8x32xbf16, #tpu.memory_space<vmem>>, vector<8x8xbf16>
    tpu.vector_store %arg18[%c0_22, %c8_23], %55 {strides = array<i32>} : memref<8x32xbf16, #tpu.memory_space<vmem>>, vector<8x8xbf16>,
    %57 = arith.index_cast %11 : i32 to index
    %c16 = arith.constant 16 : index
    %58 = vector.load %arg17[%57, %c16] : memref<8x96xbf16, #tpu.memory_space<vmem>>, vector<8x8xbf16>
    %c0_24 = arith.constant 0 : index
    %c48 = arith.constant 48 : index
    %59 = vector.load %arg17[%c0_24, %c48] : memref<8x96xbf16, #tpu.memory_space<vmem>>, vector<8x8xbf16>
    %c0_25 = arith.constant 0 : index
    %c80 = arith.constant 80 : index
    %60 = vector.load %arg17[%c0_25, %c80] : memref<8x96xbf16, #tpu.memory_space<vmem>>, vector<8x8xbf16>
    "tpu.trace_start"() <{level = 10 : i32, message = "qd,kd->qk"}> : () -> ()
    %cst_26 = arith.constant dense<0.000000e+00> : vector<8x8xf32>
    %61 = tpu.matmul %58, %59, %cst_26 {dimension_numbers = #tpu.dot_dimension_numbers<[1], [1], [0], [0], [0, 0, 1, 0], [], []>} : vector<8x8xbf16>, vector<8x8xbf16>, vector<8x8xf32> -> vector<8x8xf32>
    "tpu.trace_stop"() : () -> ()
    %62 = vector.broadcast %9 : vector<1x8xf32> to vector<8x8xf32>
    %63 = arith.addf %61, %62 : vector<8x8xf32>
    %cst_27 = arith.constant dense<0xFF800000> : vector<8xf32>
    %64 = vector.multi_reduction <maximumf>, %63, %cst_27 [1] : vector<8x8xf32> to vector<8xf32>
    %65 = vector.shape_cast %64 : vector<8xf32> to vector<8x1xf32>
    %66 = vector.broadcast %65 : vector<8x1xf32> to vector<8x8xf32>
    %67 = arith.subf %63, %66 : vector<8x8xf32>
    %68 = math.exp %67 : vector<8x8xf32>
    %cst_28 = arith.constant dense<0.000000e+00> : vector<8xf32>
    %69 = vector.multi_reduction <add>, %68, %cst_28 [1] : vector<8x8xf32> to vector<8xf32>
    %70 = vector.shape_cast %69 : vector<8xf32> to vector<8x1xf32>
    %71 = tpu.reciprocal %70 {approx = true} : vector<8x1xf32> -> vector<8x1xf32>
    %72 = vector.broadcast %71 : vector<8x1xf32> to vector<8x8xf32>
    %73 = arith.mulf %68, %72 : vector<8x8xf32>
    %74 = arith.truncf %73 : vector<8x8xf32> to vector<8x8xbf16>
    %cst_29 = arith.constant dense<0.000000e+00> : vector<8x8xf32>
    %75 = tpu.matmul %74, %60, %cst_29 {dimension_numbers = #tpu.dot_dimension_numbers<[1], [0], [0], [1], [0, 0, 1, 1], [], []>} : vector<8x8xbf16>, vector<8x8xbf16>, vector<8x8xf32> -> vector<8x8xf32>
    %76 = arith.truncf %75 : vector<8x8xf32> to vector<8x8xbf16>
    %c0_30 = arith.constant 0 : index
    %c16_31 = arith.constant 16 : index
    %77 = vector.load %arg18[%c0_30, %c16_31] : memref<8x32xbf16, #tpu.memory_space<vmem>>, vector<8x8xbf16>
    tpu.vector_store %arg18[%c0_30, %c16_31], %76 {strides = array<i32>} : memref<8x32xbf16, #tpu.memory_space<vmem>>, vector<8x8xbf16>,
    %78 = arith.index_cast %11 : i32 to index
    %c24 = arith.constant 24 : index
    %79 = vector.load %arg17[%78, %c24] : memref<8x96xbf16, #tpu.memory_space<vmem>>, vector<8x8xbf16>
    %c0_32 = arith.constant 0 : index
    %c56 = arith.constant 56 : index
    %80 = vector.load %arg17[%c0_32, %c56] : memref<8x96xbf16, #tpu.memory_space<vmem>>, vector<8x8xbf16>
    %c0_33 = arith.constant 0 : index
    %c88 = arith.constant 88 : index
    %81 = vector.load %arg17[%c0_33, %c88] : memref<8x96xbf16, #tpu.memory_space<vmem>>, vector<8x8xbf16>
    "tpu.trace_start"() <{level = 10 : i32, message = "qd,kd->qk"}> : () -> ()
    %cst_34 = arith.constant dense<0.000000e+00> : vector<8x8xf32>
    %82 = tpu.matmul %79, %80, %cst_34 {dimension_numbers = #tpu.dot_dimension_numbers<[1], [1], [0], [0], [0, 0, 1, 0], [], []>} : vector<8x8xbf16>, vector<8x8xbf16>, vector<8x8xf32> -> vector<8x8xf32>
    "tpu.trace_stop"() : () -> ()
    %83 = vector.broadcast %9 : vector<1x8xf32> to vector<8x8xf32>
    %84 = arith.addf %82, %83 : vector<8x8xf32>
    %cst_35 = arith.constant dense<0xFF800000> : vector<8xf32>
    %85 = vector.multi_reduction <maximumf>, %84, %cst_35 [1] : vector<8x8xf32> to vector<8xf32>
    %86 = vector.shape_cast %85 : vector<8xf32> to vector<8x1xf32>
    %87 = vector.broadcast %86 : vector<8x1xf32> to vector<8x8xf32>
    %88 = arith.subf %84, %87 : vector<8x8xf32>
    %89 = math.exp %88 : vector<8x8xf32>
    %cst_36 = arith.constant dense<0.000000e+00> : vector<8xf32>
    %90 = vector.multi_reduction <add>, %89, %cst_36 [1] : vector<8x8xf32> to vector<8xf32>
    %91 = vector.shape_cast %90 : vector<8xf32> to vector<8x1xf32>
    %92 = tpu.reciprocal %91 {approx = true} : vector<8x1xf32> -> vector<8x1xf32>
    %93 = vector.broadcast %92 : vector<8x1xf32> to vector<8x8xf32>
    %94 = arith.mulf %89, %93 : vector<8x8xf32>
    %95 = arith.truncf %94 : vector<8x8xf32> to vector<8x8xbf16>
    %cst_37 = arith.constant dense<0.000000e+00> : vector<8x8xf32>
    %96 = tpu.matmul %95, %81, %cst_37 {dimension_numbers = #tpu.dot_dimension_numbers<[1], [0], [0], [1], [0, 0, 1, 1], [], []>} : vector<8x8xbf16>, vector<8x8xbf16>, vector<8x8xf32> -> vector<8x8xf32>
    %97 = arith.truncf %96 : vector<8x8xf32> to vector<8x8xbf16>
    %c0_38 = arith.constant 0 : index
    %c24_39 = arith.constant 24 : index
    %98 = vector.load %arg18[%c0_38, %c24_39] : memref<8x32xbf16, #tpu.memory_space<vmem>>, vector<8x8xbf16>
    tpu.vector_store %arg18[%c0_38, %c24_39], %97 {strides = array<i32>} : memref<8x32xbf16, #tpu.memory_space<vmem>>, vector<8x8xbf16>,
    %c0_40 = arith.constant 0 : index
    %c0_41 = arith.constant 0 : index
    %99 = vector.load %arg18[%c0_40, %c0_41] : memref<8x32xbf16, #tpu.memory_space<vmem>>, vector<8x32xbf16>
    %c0_42 = arith.constant 0 : index
    %c0_43 = arith.constant 0 : index
    %100 = vector.load %arg6[%c0_42, %c0_43] : memref<32x32xbf16, #tpu.memory_space<vmem>>, vector<32x32xbf16>
    %cst_44 = arith.constant dense<0.000000e+00> : vector<8x32xf32>
    %101 = tpu.matmul %99, %100, %cst_44 {dimension_numbers = #tpu.dot_dimension_numbers<[1], [0], [0], [1], [0, 0, 1, 1], [], []>} : vector<8x32xbf16>, vector<32x32xbf16>, vector<8x32xf32> -> vector<8x32xf32>
    %c0_45 = arith.constant 0 : index
    %c0_46 = arith.constant 0 : index
    %102 = vector.load %arg7[%c0_45, %c0_46] : memref<1x32xf32, #tpu.memory_space<vmem>>, vector<1x32xf32>
    %103 = vector.shape_cast %102 : vector<1x32xf32> to vector<32xf32>
    %104 = vector.shape_cast %103 : vector<32xf32> to vector<1x32xf32>
    %105 = vector.broadcast %104 : vector<1x32xf32> to vector<8x32xf32>
    %106 = arith.addf %101, %105 : vector<8x32xf32>
    %107 = arith.addf %14, %106 : vector<8x32xf32>
    %c0_47 = arith.constant 0 : index
    %c0_48 = arith.constant 0 : index
    %108 = vector.load %arg10[%c0_47, %c0_48] : memref<1x32xf32, #tpu.memory_space<vmem>>, vector<1x32xf32>
    %109 = vector.shape_cast %108 : vector<1x32xf32> to vector<32xf32>
    %c0_49 = arith.constant 0 : index
    %c0_50 = arith.constant 0 : index
    %110 = vector.load %arg11[%c0_49, %c0_50] : memref<1x32xf32, #tpu.memory_space<vmem>>, vector<1x32xf32>
    %111 = vector.shape_cast %110 : vector<1x32xf32> to vector<32xf32>
    %cst_51 = arith.constant dense<0.000000e+00> : vector<8xf32>
    %112 = vector.multi_reduction <add>, %107, %cst_51 [1] : vector<8x32xf32> to vector<8xf32>
    %113 = vector.shape_cast %112 : vector<8xf32> to vector<8x1xf32>
    %cst_52 = arith.constant 3.200000e+01 : f32
    %114 = vector.broadcast %cst_52 : f32 to vector<8x1xf32>
    %115 = arith.divf %113, %114 : vector<8x1xf32>
    %116 = vector.broadcast %115 : vector<8x1xf32> to vector<8x32xf32>
    %117 = arith.subf %107, %116 : vector<8x32xf32>
    %118 = arith.mulf %117, %117 : vector<8x32xf32>
    %cst_53 = arith.constant dense<0.000000e+00> : vector<8xf32>
    %119 = vector.multi_reduction <add>, %118, %cst_53 [1] : vector<8x32xf32> to vector<8xf32>
    %120 = vector.shape_cast %119 : vector<8xf32> to vector<8x1xf32>
    %cst_54 = arith.constant 0.0322580636 : f32
    %121 = vector.broadcast %cst_54 : f32 to vector<8x1xf32>
    %122 = arith.mulf %120, %121 : vector<8x1xf32>
    %123 = math.sqrt %122 : vector<8x1xf32>
    %cst_55 = arith.constant 9.99999997E-7 : f32
    %124 = vector.broadcast %cst_55 : f32 to vector<8x1xf32>
    %125 = arith.addf %123, %124 : vector<8x1xf32>
    %126 = tpu.reciprocal %125 : vector<8x1xf32> -> vector<8x1xf32>
    %127 = vector.shape_cast %109 : vector<32xf32> to vector<1x32xf32>
    %128 = vector.broadcast %127 : vector<1x32xf32> to vector<8x32xf32>
    %129 = arith.mulf %128, %117 : vector<8x32xf32>
    %130 = vector.broadcast %126 : vector<8x1xf32> to vector<8x32xf32>
    %131 = arith.mulf %129, %130 : vector<8x32xf32>
    %132 = vector.shape_cast %111 : vector<32xf32> to vector<1x32xf32>
    %133 = vector.broadcast %132 : vector<1x32xf32> to vector<8x32xf32>
    %134 = arith.addf %131, %133 : vector<8x32xf32>
    %135 = arith.truncf %134 : vector<8x32xf32> to vector<8x32xbf16>
    %c0_56 = arith.constant 0 : index
    %c0_57 = arith.constant 0 : index
    %136 = vector.load %arg12[%c0_56, %c0_57] : memref<32x128xbf16, #tpu.memory_space<vmem>>, vector<32x128xbf16>
    %cst_58 = arith.constant dense<0.000000e+00> : vector<8x128xf32>
    %137 = tpu.matmul %135, %136, %cst_58 {dimension_numbers = #tpu.dot_dimension_numbers<[1], [0], [0], [1], [0, 0, 1, 1], [], []>} : vector<8x32xbf16>, vector<32x128xbf16>, vector<8x128xf32> -> vector<8x128xf32>
    %c0_59 = arith.constant 0 : index
    %c0_60 = arith.constant 0 : index
    %138 = vector.load %arg13[%c0_59, %c0_60] : memref<1x128xf32, #tpu.memory_space<vmem>>, vector<1x128xf32>
    %139 = vector.shape_cast %138 : vector<1x128xf32> to vector<128xf32>
    %140 = vector.shape_cast %139 : vector<128xf32> to vector<1x128xf32>
    %141 = vector.broadcast %140 : vector<1x128xf32> to vector<8x128xf32>
    %142 = arith.addf %137, %141 : vector<8x128xf32>
    %143 = arith.truncf %142 : vector<8x128xf32> to vector<8x128xbf16>
    %cst_61 = arith.constant 5.000000e-01 : bf16
    %144 = vector.broadcast %cst_61 : bf16 to vector<8x128xbf16>
    %145 = arith.mulf %144, %143 : vector<8x128xbf16>
    %cst_62 = arith.constant 4.467770e-02 : bf16
    %146 = vector.broadcast %cst_62 : bf16 to vector<8x128xbf16>
    %147 = arith.mulf %146, %143 : vector<8x128xbf16>
    %148 = arith.mulf %147, %143 : vector<8x128xbf16>
    %149 = arith.mulf %148, %143 : vector<8x128xbf16>
    %150 = arith.addf %143, %149 : vector<8x128xbf16>
    %cst_63 = arith.constant 7.968750e-01 : bf16
    %151 = vector.broadcast %cst_63 : bf16 to vector<8x128xbf16>
    %152 = arith.mulf %151, %150 : vector<8x128xbf16>
    %153 = math.tanh %152 : vector<8x128xbf16>
    %cst_64 = arith.constant 1.000000e+00 : bf16
    %154 = vector.broadcast %cst_64 : bf16 to vector<8x128xbf16>
    %155 = arith.addf %154, %153 : vector<8x128xbf16>
    %156 = arith.mulf %145, %155 : vector<8x128xbf16>
    %c0_65 = arith.constant 0 : index
    %c0_66 = arith.constant 0 : index
    %157 = vector.load %arg14[%c0_65, %c0_66] : memref<128x32xbf16, #tpu.memory_space<vmem>>, vector<128x32xbf16>
    %cst_67 = arith.constant dense<0.000000e+00> : vector<8x32xf32>
    %158 = tpu.matmul %156, %157, %cst_67 {dimension_numbers = #tpu.dot_dimension_numbers<[1], [0], [0], [1], [0, 0, 1, 1], [], []>} : vector<8x128xbf16>, vector<128x32xbf16>, vector<8x32xf32> -> vector<8x32xf32>
    %c0_68 = arith.constant 0 : index
    %c0_69 = arith.constant 0 : index
    %159 = vector.load %arg15[%c0_68, %c0_69] : memref<1x32xf32, #tpu.memory_space<vmem>>, vector<1x32xf32>
    %160 = vector.shape_cast %159 : vector<1x32xf32> to vector<32xf32>
    %161 = vector.shape_cast %160 : vector<32xf32> to vector<1x32xf32>
    %162 = vector.broadcast %161 : vector<1x32xf32> to vector<8x32xf32>
    %163 = arith.addf %158, %162 : vector<8x32xf32>
    %164 = arith.addf %107, %163 : vector<8x32xf32>
    %c0_70 = arith.constant 0 : index
    %c0_71 = arith.constant 0 : index
    %c0_72 = arith.constant 0 : index
    %165 = vector.load %arg16[%c0_70, %c0_71, %c0_72] : memref<1x8x32xf32, #tpu.memory_space<vmem>>, vector<1x8x32xf32>
    %166 = vector.shape_cast %165 : vector<1x8x32xf32> to vector<8x32xf32>
    %167 = vector.shape_cast %164 : vector<8x32xf32> to vector<1x8x32xf32>
    tpu.vector_store %arg16[%c0_70, %c0_71, %c0_72], %167 {strides = array<i32>} : memref<1x8x32xf32, #tpu.memory_space<vmem>>, vector<1x8x32xf32>,
    return
  }
  func.func @transform_0(%arg0: i32, %arg1: i32) -> (i32, i32, i32) {
    %c0_i32 = arith.constant 0 : i32
    %c0_i32_0 = arith.constant 0 : i32
    %c0_i32_1 = arith.constant 0 : i32
    return %arg0, %c0_i32, %c0_i32_0 : i32, i32, i32
  }
  func.func @transform_1(%arg0: i32, %arg1: i32) -> (i32, i32, i32) {
    %c0_i32 = arith.constant 0 : i32
    %c0_i32_0 = arith.constant 0 : i32
    %c0_i32_1 = arith.constant 0 : i32
    return %arg0, %c0_i32, %c0_i32_0 : i32, i32, i32
  }
  func.func @transform_2(%arg0: i32, %arg1: i32) -> (i32, i32) {
    %c0_i32 = arith.constant 0 : i32
    %c0_i32_0 = arith.constant 0 : i32
    %c0_i32_1 = arith.constant 0 : i32
    return %c0_i32, %c0_i32_0 : i32, i32
  }
  func.func @transform_3(%arg0: i32, %arg1: i32) -> (i32, i32) {
    %c0_i32 = arith.constant 0 : i32
    %c0_i32_0 = arith.constant 0 : i32
    %c0_i32_1 = arith.constant 0 : i32
    return %c0_i32, %c0_i32_0 : i32, i32
  }
  func.func @transform_4(%arg0: i32, %arg1: i32) -> (i32, i32) {
    %c0_i32 = arith.constant 0 : i32
    %c0_i32_0 = arith.constant 0 : i32
    %c0_i32_1 = arith.constant 0 : i32
    return %c0_i32, %c0_i32_0 : i32, i32
  }
  func.func @transform_5(%arg0: i32, %arg1: i32) -> (i32, i32) {
    %c0_i32 = arith.constant 0 : i32
    %c0_i32_0 = arith.constant 0 : i32
    %c0_i32_1 = arith.constant 0 : i32
    return %c0_i32, %c0_i32_0 : i32, i32
  }
  func.func @transform_6(%arg0: i32, %arg1: i32) -> (i32, i32) {
    %c0_i32 = arith.constant 0 : i32
    %c0_i32_0 = arith.constant 0 : i32
    %c0_i32_1 = arith.constant 0 : i32
    return %c0_i32, %c0_i32_0 : i32, i32
  }
  func.func @transform_7(%arg0: i32, %arg1: i32) -> (i32, i32) {
    %c0_i32 = arith.constant 0 : i32
    %c0_i32_0 = arith.constant 0 : i32
    %c0_i32_1 = arith.constant 0 : i32
    return %c0_i32, %c0_i32_0 : i32, i32
  }
  func.func @transform_8(%arg0: i32, %arg1: i32) -> (i32, i32) {
    %c0_i32 = arith.constant 0 : i32
    %c0_i32_0 = arith.constant 0 : i32
    %c0_i32_1 = arith.constant 0 : i32
    return %c0_i32, %c0_i32_0 : i32, i32
  }
  func.func @transform_9(%arg0: i32, %arg1: i32) -> (i32, i32) {
    %c0_i32 = arith.constant 0 : i32
    %c0_i32_0 = arith.constant 0 : i32
    %c0_i32_1 = arith.constant 0 : i32
    return %c0_i32, %c0_i32_0 : i32, i32
  }
  func.func @transform_10(%arg0: i32, %arg1: i32) -> (i32, i32) {
    %c0_i32 = arith.constant 0 : i32
    %c0_i32_0 = arith.constant 0 : i32
    %c0_i32_1 = arith.constant 0 : i32
    return %c0_i32, %c0_i32_0 : i32, i32
  }
  func.func @transform_11(%arg0: i32, %arg1: i32) -> (i32, i32) {
    %c0_i32 = arith.constant 0 : i32
    %c0_i32_0 = arith.constant 0 : i32
    %c0_i32_1 = arith.constant 0 : i32
    return %c0_i32, %c0_i32_0 : i32, i32
  }
  func.func @transform_12(%arg0: i32, %arg1: i32) -> (i32, i32) {
    %c0_i32 = arith.constant 0 : i32
    %c0_i32_0 = arith.constant 0 : i32
    %c0_i32_1 = arith.constant 0 : i32
    return %c0_i32, %c0_i32_0 : i32, i32
  }
  func.func @transform_13(%arg0: i32, %arg1: i32) -> (i32, i32) {
    %c0_i32 = arith.constant 0 : i32
    %c0_i32_0 = arith.constant 0 : i32
    %c0_i32_1 = arith.constant 0 : i32
    return %c0_i32, %c0_i32_0 : i32, i32
  }
  func.func @transform_14(%arg0: i32, %arg1: i32) -> (i32, i32, i32) {
    %c0_i32 = arith.constant 0 : i32
    %c0_i32_0 = arith.constant 0 : i32
    return %arg0, %arg1, %c0_i32 : i32, i32, i32
  }
}

module attributes {stable_mosaic.version = 11 : i64} {
  func.func @transformer_block_kernel(%arg0: i32, %arg1: i32, %arg2: memref<1x8x32xf32, #tpu.memory_space<vmem>>, %arg3: memref<1x1x8xi32, #tpu.memory_space<vmem>>, %arg4: memref<32x96xbf16, #tpu.memory_space<vmem>>, %arg5: memref<1x96xf32, #tpu.memory_space<vmem>>, %arg6: memref<32x32xbf16, #tpu.memory_space<vmem>>, %arg7: memref<1x32xf32, #tpu.memory_space<vmem>>, %arg8: memref<1x32xf32, #tpu.memory_space<vmem>>, %arg9: memref<1x32xf32, #tpu.memory_space<vmem>>, %arg10: memref<1x32xf32, #tpu.memory_space<vmem>>, %arg11: memref<1x32xf32, #tpu.memory_space<vmem>>, %arg12: memref<32x128xbf16, #tpu.memory_space<vmem>>, %arg13: memref<1x128xf32, #tpu.memory_space<vmem>>, %arg14: memref<128x32xbf16, #tpu.memory_space<vmem>>, %arg15: memref<1x32xf32, #tpu.memory_space<vmem>>, %arg16: memref<1x8x32xf32, #tpu.memory_space<vmem>>, %arg17: memref<8x96xbf16, #tpu.memory_space<vmem>>, %arg18: memref<8x32xbf16, #tpu.memory_space<vmem>>) attributes {dimension_semantics = [#tpu.dimension_semantics<parallel>, #tpu.dimension_semantics<arbitrary>], iteration_bounds = array<i64: 2, 1>, scalar_prefetch = 0 : i64, scratch_operands = 2 : i64, tpu.core_type = #tpu.core_type<tc>, window_params = [{transform_indices = @transform_0, window_bounds = array<i64: 1, 8, 32>}, {transform_indices = @transform_1, window_bounds = array<i64: 1, 1, 8>}, {pipeline_mode = #tpu.pipeline_mode<synchronous>, transform_indices = @transform_2, window_bounds = array<i64: 32, 96>}, {pipeline_mode = #tpu.pipeline_mode<synchronous>, transform_indices = @transform_3, window_bounds = array<i64: 1, 96>}, {pipeline_mode = #tpu.pipeline_mode<synchronous>, transform_indices = @transform_4, window_bounds = array<i64: 32, 32>}, {pipeline_mode = #tpu.pipeline_mode<synchronous>, transform_indices = @transform_5, window_bounds = array<i64: 1, 32>}, {pipeline_mode = #tpu.pipeline_mode<synchronous>, transform_indices = @transform_6, window_bounds = array<i64: 1, 32>}, {pipeline_mode = #tpu.pipeline_mode<synchronous>, transform_indices = @transform_7, window_bounds = array<i64: 1, 32>}, {pipeline_mode = #tpu.pipeline_mode<synchronous>, transform_indices = @transform_8, window_bounds = array<i64: 1, 32>}, {pipeline_mode = #tpu.pipeline_mode<synchronous>, transform_indices = @transform_9, window_bounds = array<i64: 1, 32>}, {pipeline_mode = #tpu.pipeline_mode<synchronous>, transform_indices = @transform_10, window_bounds = array<i64: 32, 128>}, {pipeline_mode = #tpu.pipeline_mode<synchronous>, transform_indices = @transform_11, window_bounds = array<i64: 1, 128>}, {pipeline_mode = #tpu.pipeline_mode<synchronous>, transform_indices = @transform_12, window_bounds = array<i64: 128, 32>}, {pipeline_mode = #tpu.pipeline_mode<synchronous>, transform_indices = @transform_13, window_bounds = array<i64: 1, 32>}, {transform_indices = @transform_14, window_bounds = array<i64: 1, 8, 32>}]} {
    %c0_i32 = arith.constant 0 : i32
    %0 = arith.cmpi eq, %arg1, %c0_i32 : i32
    %1 = arith.extui %0 : i1 to i32
    %c0_i32_0 = arith.constant 0 : i32
    %2 = arith.cmpi ne, %1, %c0_i32_0 : i32
    scf.if %2 {
      %c0_73 = arith.constant 0 : index
      %c0_74 = arith.constant 0 : index
      %c0_75 = arith.constant 0 : index
      %168 = vector.load %arg2[%c0_73, %c0_74, %c0_75] : memref<1x8x32xf32, #tpu.memory_space<vmem>>, vector<1x8x32xf32>
      %169 = vector.shape_cast %168 : vector<1x8x32xf32> to vector<8x32xf32>
      %c0_76 = arith.constant 0 : index
      %c0_77 = arith.constant 0 : index
      %170 = vector.load %arg8[%c0_76, %c0_77] : memref<1x32xf32, #tpu.memory_space<vmem>>, vector<1x32xf32>
      %171 = vector.shape_cast %170 : vector<1x32xf32> to vector<32xf32>
      %c0_78 = arith.constant 0 : index
      %c0_79 = arith.constant 0 : index
      %172 = vector.load %arg9[%c0_78, %c0_79] : memref<1x32xf32, #tpu.memory_space<vmem>>, vector<1x32xf32>
      %173 = vector.shape_cast %172 : vector<1x32xf32> to vector<32xf32>
      %cst_80 = arith.constant dense<0.000000e+00> : vector<8xf32>
      %174 = vector.multi_reduction <add>, %169, %cst_80 [1] : vector<8x32xf32> to vector<8xf32>
      %175 = vector.shape_cast %174 : vector<8xf32> to vector<8x1xf32>
      %cst_81 = arith.constant 3.200000e+01 : f32
      %176 = vector.broadcast %cst_81 : f32 to vector<8x1xf32>
      %177 = arith.divf %175, %176 : vector<8x1xf32>
      %178 = vector.broadcast %177 : vector<8x1xf32> to vector<8x32xf32>
      %179 = arith.subf %169, %178 : vector<8x32xf32>
      %180 = arith.mulf %179, %179 : vector<8x32xf32>
      %cst_82 = arith.constant dense<0.000000e+00> : vector<8xf32>
      %181 = vector.multi_reduction <add>, %180, %cst_82 [1] : vector<8x32xf32> to vector<8xf32>
      %182 = vector.shape_cast %181 : vector<8xf32> to vector<8x1xf32>
      %cst_83 = arith.constant 0.0322580636 : f32
      %183 = vector.broadcast %cst_83 : f32 to vector<8x1xf32>
      %184 = arith.mulf %182, %183 : vector<8x1xf32>
      %185 = math.sqrt %184 : vector<8x1xf32>
      %cst_84 = arith.constant 9.99999997E-7 : f32
      %186 = vector.broadcast %cst_84 : f32 to vector<8x1xf32>
      %187 = arith.addf %185, %186 : vector<8x1xf32>
      %188 = tpu.reciprocal %187 : vector<8x1xf32> -> vector<8x1xf32>
      %189 = vector.shape_cast %171 : vector<32xf32> to vector<1x32xf32>
      %190 = vector.broadcast %189 : vector<1x32xf32> to vector<8x32xf32>
      %191 = arith.mulf %190, %179 : vector<8x32xf32>
      %192 = vector.broadcast %188 : vector<8x1xf32> to vector<8x32xf32>
      %193 = arith.mulf %191, %192 : vector<8x32xf32>
      %194 = vector.shape_cast %173 : vector<32xf32> to vector<1x32xf32>
      %195 = vector.broadcast %194 : vector<1x32xf32> to vector<8x32xf32>
      %196 = arith.addf %193, %195 : vector<8x32xf32>
      %197 = arith.truncf %196 : vector<8x32xf32> to vector<8x32xbf16>
      %c0_85 = arith.constant 0 : index
      %c0_86 = arith.constant 0 : index
      %198 = vector.load %arg4[%c0_85, %c0_86] : memref<32x96xbf16, #tpu.memory_space<vmem>>, vector<32x96xbf16>
      %cst_87 = arith.constant dense<0.000000e+00> : vector<8x96xf32>
      %199 = tpu.matmul %197, %198, %cst_87 {dimension_numbers = #tpu.dot_dimension_numbers<[1], [0], [0], [1], [0, 0, 1, 1], [], []>} : vector<8x32xbf16>, vector<32x96xbf16>, vector<8x96xf32> -> vector<8x96xf32>
      %c0_88 = arith.constant 0 : index
      %c0_89 = arith.constant 0 : index
      %200 = vector.load %arg5[%c0_88, %c0_89] : memref<1x96xf32, #tpu.memory_space<vmem>>, vector<1x96xf32>
      %201 = vector.shape_cast %200 : vector<1x96xf32> to vector<96xf32>
      %202 = vector.shape_cast %201 : vector<96xf32> to vector<1x96xf32>
      %203 = vector.broadcast %202 : vector<1x96xf32> to vector<8x96xf32>
      %204 = arith.addf %199, %203 : vector<8x96xf32>
      %205 = arith.truncf %204 : vector<8x96xf32> to vector<8x96xbf16>
      %c0_90 = arith.constant 0 : index
      %c0_91 = arith.constant 0 : index
      %206 = vector.load %arg17[%c0_90, %c0_91] : memref<8x96xbf16, #tpu.memory_space<vmem>>, vector<8x96xbf16>
      tpu.vector_store %arg17[%c0_90, %c0_91], %205 {strides = array<i32>} : memref<8x96xbf16, #tpu.memory_space<vmem>>, vector<8x96xbf16>,
    } else {
    }
    %c0 = arith.constant 0 : index
    %c0_1 = arith.constant 0 : index
    %c0_2 = arith.constant 0 : index
    %3 = vector.load %arg3[%c0, %c0_1, %c0_2] : memref<1x1x8xi32, #tpu.memory_space<vmem>>, vector<1x1x8xi32>
    %4 = vector.shape_cast %3 : vector<1x1x8xi32> to vector<1x8xi32>
    %c0_i32_3 = arith.constant 0 : i32
    %5 = vector.broadcast %c0_i32_3 : i32 to vector<1x8xi32>
    %6 = arith.cmpi eq, %4, %5 : vector<1x8xi32>
    %cst = arith.constant -1.000000e+09 : f32
    %cst_4 = arith.constant 0.000000e+00 : f32
    %7 = vector.broadcast %cst : f32 to vector<1x8xf32>
    %8 = vector.broadcast %cst_4 : f32 to vector<1x8xf32>
    %9 = arith.select %6, %7, %8 : vector<1x8xi1>, vector<1x8xf32>
    %c8_i32 = arith.constant 8 : i32
    %10 = arith.muli %arg1, %c8_i32 : i32
    %11 = tpu.assume_multiple %10, 8 : i32
    %c0_5 = arith.constant 0 : index
    %12 = arith.index_cast %11 : i32 to index
    %c0_6 = arith.constant 0 : index
    %13 = vector.load %arg2[%c0_5, %12, %c0_6] : memref<1x8x32xf32, #tpu.memory_space<vmem>>, vector<1x8x32xf32>
    %14 = vector.shape_cast %13 : vector<1x8x32xf32> to vector<8x32xf32>
    %15 = arith.index_cast %11 : i32 to index
    %c0_7 = arith.constant 0 : index
    %16 = vector.load %arg17[%15, %c0_7] : memref<8x96xbf16, #tpu.memory_space<vmem>>, vector<8x8xbf16>
    %c0_8 = arith.constant 0 : index
    %c32 = arith.constant 32 : index
    %17 = vector.load %arg17[%c0_8, %c32] : memref<8x96xbf16, #tpu.memory_space<vmem>>, vector<8x8xbf16>
    %c0_9 = arith.constant 0 : index
    %c64 = arith.constant 64 : index
    %18 = vector.load %arg17[%c0_9, %c64] : memref<8x96xbf16, #tpu.memory_space<vmem>>, vector<8x8xbf16>
    "tpu.trace_start"() <{level = 10 : i32, message = "qd,kd->qk"}> : () -> ()
    %cst_10 = arith.constant dense<0.000000e+00> : vector<8x8xf32>
    %19 = tpu.matmul %16, %17, %cst_10 {dimension_numbers = #tpu.dot_dimension_numbers<[1], [1], [0], [0], [0, 0, 1, 0], [], []>} : vector<8x8xbf16>, vector<8x8xbf16>, vector<8x8xf32> -> vector<8x8xf32>
    "tpu.trace_stop"() : () -> ()
    %20 = vector.broadcast %9 : vector<1x8xf32> to vector<8x8xf32>
    %21 = arith.addf %19, %20 : vector<8x8xf32>
    %cst_11 = arith.constant dense<0xFF800000> : vector<8xf32>
    %22 = vector.multi_reduction <maximumf>, %21, %cst_11 [1] : vector<8x8xf32> to vector<8xf32>
    %23 = vector.shape_cast %22 : vector<8xf32> to vector<8x1xf32>
    %24 = vector.broadcast %23 : vector<8x1xf32> to vector<8x8xf32>
    %25 = arith.subf %21, %24 : vector<8x8xf32>
    %26 = math.exp %25 : vector<8x8xf32>
    %cst_12 = arith.constant dense<0.000000e+00> : vector<8xf32>
    %27 = vector.multi_reduction <add>, %26, %cst_12 [1] : vector<8x8xf32> to vector<8xf32>
    %28 = vector.shape_cast %27 : vector<8xf32> to vector<8x1xf32>
    %29 = tpu.reciprocal %28 {approx = true} : vector<8x1xf32> -> vector<8x1xf32>
    %30 = vector.broadcast %29 : vector<8x1xf32> to vector<8x8xf32>
    %31 = arith.mulf %26, %30 : vector<8x8xf32>
    %32 = arith.truncf %31 : vector<8x8xf32> to vector<8x8xbf16>
    %cst_13 = arith.constant dense<0.000000e+00> : vector<8x8xf32>
    %33 = tpu.matmul %32, %18, %cst_13 {dimension_numbers = #tpu.dot_dimension_numbers<[1], [0], [0], [1], [0, 0, 1, 1], [], []>} : vector<8x8xbf16>, vector<8x8xbf16>, vector<8x8xf32> -> vector<8x8xf32>
    %34 = arith.truncf %33 : vector<8x8xf32> to vector<8x8xbf16>
    %c0_14 = arith.constant 0 : index
    %c0_15 = arith.constant 0 : index
    %35 = vector.load %arg18[%c0_14, %c0_15] : memref<8x32xbf16, #tpu.memory_space<vmem>>, vector<8x8xbf16>
    tpu.vector_store %arg18[%c0_14, %c0_15], %34 {strides = array<i32>} : memref<8x32xbf16, #tpu.memory_space<vmem>>, vector<8x8xbf16>,
    %36 = arith.index_cast %11 : i32 to index
    %c8 = arith.constant 8 : index
    %37 = vector.load %arg17[%36, %c8] : memref<8x96xbf16, #tpu.memory_space<vmem>>, vector<8x8xbf16>
    %c0_16 = arith.constant 0 : index
    %c40 = arith.constant 40 : index
    %38 = vector.load %arg17[%c0_16, %c40] : memref<8x96xbf16, #tpu.memory_space<vmem>>, vector<8x8xbf16>
    %c0_17 = arith.constant 0 : index
    %c72 = arith.constant 72 : index
    %39 = vector.load %arg17[%c0_17, %c72] : memref<8x96xbf16, #tpu.memory_space<vmem>>, vector<8x8xbf16>
    "tpu.trace_start"() <{level = 10 : i32, message = "qd,kd->qk"}> : () -> ()
    %cst_18 = arith.constant dense<0.000000e+00> : vector<8x8xf32>
    %40 = tpu.matmul %37, %38, %cst_18 {dimension_numbers = #tpu.dot_dimension_numbers<[1], [1], [0], [0], [0, 0, 1, 0], [], []>} : vector<8x8xbf16>, vector<8x8xbf16>, vector<8x8xf32> -> vector<8x8xf32>
    "tpu.trace_stop"() : () -> ()
    %41 = vector.broadcast %9 : vector<1x8xf32> to vector<8x8xf32>
    %42 = arith.addf %40, %41 : vector<8x8xf32>
    %cst_19 = arith.constant dense<0xFF800000> : vector<8xf32>
    %43 = vector.multi_reduction <maximumf>, %42, %cst_19 [1] : vector<8x8xf32> to vector<8xf32>
    %44 = vector.shape_cast %43 : vector<8xf32> to vector<8x1xf32>
    %45 = vector.broadcast %44 : vector<8x1xf32> to vector<8x8xf32>
    %46 = arith.subf %42, %45 : vector<8x8xf32>
    %47 = math.exp %46 : vector<8x8xf32>
    %cst_20 = arith.constant dense<0.000000e+00> : vector<8xf32>
    %48 = vector.multi_reduction <add>, %47, %cst_20 [1] : vector<8x8xf32> to vector<8xf32>
    %49 = vector.shape_cast %48 : vector<8xf32> to vector<8x1xf32>
    %50 = tpu.reciprocal %49 {approx = true} : vector<8x1xf32> -> vector<8x1xf32>
    %51 = vector.broadcast %50 : vector<8x1xf32> to vector<8x8xf32>
    %52 = arith.mulf %47, %51 : vector<8x8xf32>
    %53 = arith.truncf %52 : vector<8x8xf32> to vector<8x8xbf16>
    %cst_21 = arith.constant dense<0.000000e+00> : vector<8x8xf32>
    %54 = tpu.matmul %53, %39, %cst_21 {dimension_numbers = #tpu.dot_dimension_numbers<[1], [0], [0], [1], [0, 0, 1, 1], [], []>} : vector<8x8xbf16>, vector<8x8xbf16>, vector<8x8xf32> -> vector<8x8xf32>
    %55 = arith.truncf %54 : vector<8x8xf32> to vector<8x8xbf16>
    %c0_22 = arith.constant 0 : index
    %c8_23 = arith.constant 8 : index
    %56 = vector.load %arg18[%c0_22, %c8_23] : memref<8x32xbf16, #tpu.memory_space<vmem>>, vector<8x8xbf16>
    tpu.vector_store %arg18[%c0_22, %c8_23], %55 {strides = array<i32>} : memref<8x32xbf16, #tpu.memory_space<vmem>>, vector<8x8xbf16>,
    %57 = arith.index_cast %11 : i32 to index
    %c16 = arith.constant 16 : index
    %58 = vector.load %arg17[%57, %c16] : memref<8x96xbf16, #tpu.memory_space<vmem>>, vector<8x8xbf16>
    %c0_24 = arith.constant 0 : index
    %c48 = arith.constant 48 : index
    %59 = vector.load %arg17[%c0_24, %c48] : memref<8x96xbf16, #tpu.memory_space<vmem>>, vector<8x8xbf16>
    %c0_25 = arith.constant 0 : index
    %c80 = arith.constant 80 : index
    %60 = vector.load %arg17[%c0_25, %c80] : memref<8x96xbf16, #tpu.memory_space<vmem>>, vector<8x8xbf16>
    "tpu.trace_start"() <{level = 10 : i32, message = "qd,kd->qk"}> : () -> ()
    %cst_26 = arith.constant dense<0.000000e+00> : vector<8x8xf32>
    %61 = tpu.matmul %58, %59, %cst_26 {dimension_numbers = #tpu.dot_dimension_numbers<[1], [1], [0], [0], [0, 0, 1, 0], [], []>} : vector<8x8xbf16>, vector<8x8xbf16>, vector<8x8xf32> -> vector<8x8xf32>
    "tpu.trace_stop"() : () -> ()
    %62 = vector.broadcast %9 : vector<1x8xf32> to vector<8x8xf32>
    %63 = arith.addf %61, %62 : vector<8x8xf32>
    %cst_27 = arith.constant dense<0xFF800000> : vector<8xf32>
    %64 = vector.multi_reduction <maximumf>, %63, %cst_27 [1] : vector<8x8xf32> to vector<8xf32>
    %65 = vector.shape_cast %64 : vector<8xf32> to vector<8x1xf32>
    %66 = vector.broadcast %65 : vector<8x1xf32> to vector<8x8xf32>
    %67 = arith.subf %63, %66 : vector<8x8xf32>
    %68 = math.exp %67 : vector<8x8xf32>
    %cst_28 = arith.constant dense<0.000000e+00> : vector<8xf32>
    %69 = vector.multi_reduction <add>, %68, %cst_28 [1] : vector<8x8xf32> to vector<8xf32>
    %70 = vector.shape_cast %69 : vector<8xf32> to vector<8x1xf32>
    %71 = tpu.reciprocal %70 {approx = true} : vector<8x1xf32> -> vector<8x1xf32>
    %72 = vector.broadcast %71 : vector<8x1xf32> to vector<8x8xf32>
    %73 = arith.mulf %68, %72 : vector<8x8xf32>
    %74 = arith.truncf %73 : vector<8x8xf32> to vector<8x8xbf16>
    %cst_29 = arith.constant dense<0.000000e+00> : vector<8x8xf32>
    %75 = tpu.matmul %74, %60, %cst_29 {dimension_numbers = #tpu.dot_dimension_numbers<[1], [0], [0], [1], [0, 0, 1, 1], [], []>} : vector<8x8xbf16>, vector<8x8xbf16>, vector<8x8xf32> -> vector<8x8xf32>
    %76 = arith.truncf %75 : vector<8x8xf32> to vector<8x8xbf16>
    %c0_30 = arith.constant 0 : index
    %c16_31 = arith.constant 16 : index
    %77 = vector.load %arg18[%c0_30, %c16_31] : memref<8x32xbf16, #tpu.memory_space<vmem>>, vector<8x8xbf16>
    tpu.vector_store %arg18[%c0_30, %c16_31], %76 {strides = array<i32>} : memref<8x32xbf16, #tpu.memory_space<vmem>>, vector<8x8xbf16>,
    %78 = arith.index_cast %11 : i32 to index
    %c24 = arith.constant 24 : index
    %79 = vector.load %arg17[%78, %c24] : memref<8x96xbf16, #tpu.memory_space<vmem>>, vector<8x8xbf16>
    %c0_32 = arith.constant 0 : index
    %c56 = arith.constant 56 : index
    %80 = vector.load %arg17[%c0_32, %c56] : memref<8x96xbf16, #tpu.memory_space<vmem>>, vector<8x8xbf16>
    %c0_33 = arith.constant 0 : index
    %c88 = arith.constant 88 : index
    %81 = vector.load %arg17[%c0_33, %c88] : memref<8x96xbf16, #tpu.memory_space<vmem>>, vector<8x8xbf16>
    "tpu.trace_start"() <{level = 10 : i32, message = "qd,kd->qk"}> : () -> ()
    %cst_34 = arith.constant dense<0.000000e+00> : vector<8x8xf32>
    %82 = tpu.matmul %79, %80, %cst_34 {dimension_numbers = #tpu.dot_dimension_numbers<[1], [1], [0], [0], [0, 0, 1, 0], [], []>} : vector<8x8xbf16>, vector<8x8xbf16>, vector<8x8xf32> -> vector<8x8xf32>
    "tpu.trace_stop"() : () -> ()
    %83 = vector.broadcast %9 : vector<1x8xf32> to vector<8x8xf32>
    %84 = arith.addf %82, %83 : vector<8x8xf32>
    %cst_35 = arith.constant dense<0xFF800000> : vector<8xf32>
    %85 = vector.multi_reduction <maximumf>, %84, %cst_35 [1] : vector<8x8xf32> to vector<8xf32>
    %86 = vector.shape_cast %85 : vector<8xf32> to vector<8x1xf32>
    %87 = vector.broadcast %86 : vector<8x1xf32> to vector<8x8xf32>
    %88 = arith.subf %84, %87 : vector<8x8xf32>
    %89 = math.exp %88 : vector<8x8xf32>
    %cst_36 = arith.constant dense<0.000000e+00> : vector<8xf32>
    %90 = vector.multi_reduction <add>, %89, %cst_36 [1] : vector<8x8xf32> to vector<8xf32>
    %91 = vector.shape_cast %90 : vector<8xf32> to vector<8x1xf32>
    %92 = tpu.reciprocal %91 {approx = true} : vector<8x1xf32> -> vector<8x1xf32>
    %93 = vector.broadcast %92 : vector<8x1xf32> to vector<8x8xf32>
    %94 = arith.mulf %89, %93 : vector<8x8xf32>
    %95 = arith.truncf %94 : vector<8x8xf32> to vector<8x8xbf16>
    %cst_37 = arith.constant dense<0.000000e+00> : vector<8x8xf32>
    %96 = tpu.matmul %95, %81, %cst_37 {dimension_numbers = #tpu.dot_dimension_numbers<[1], [0], [0], [1], [0, 0, 1, 1], [], []>} : vector<8x8xbf16>, vector<8x8xbf16>, vector<8x8xf32> -> vector<8x8xf32>
    %97 = arith.truncf %96 : vector<8x8xf32> to vector<8x8xbf16>
    %c0_38 = arith.constant 0 : index
    %c24_39 = arith.constant 24 : index
    %98 = vector.load %arg18[%c0_38, %c24_39] : memref<8x32xbf16, #tpu.memory_space<vmem>>, vector<8x8xbf16>
    tpu.vector_store %arg18[%c0_38, %c24_39], %97 {strides = array<i32>} : memref<8x32xbf16, #tpu.memory_space<vmem>>, vector<8x8xbf16>,
    %c0_40 = arith.constant 0 : index
    %c0_41 = arith.constant 0 : index
    %99 = vector.load %arg18[%c0_40, %c0_41] : memref<8x32xbf16, #tpu.memory_space<vmem>>, vector<8x32xbf16>
    %c0_42 = arith.constant 0 : index
    %c0_43 = arith.constant 0 : index
    %100 = vector.load %arg6[%c0_42, %c0_43] : memref<32x32xbf16, #tpu.memory_space<vmem>>, vector<32x32xbf16>
    %cst_44 = arith.constant dense<0.000000e+00> : vector<8x32xf32>
    %101 = tpu.matmul %99, %100, %cst_44 {dimension_numbers = #tpu.dot_dimension_numbers<[1], [0], [0], [1], [0, 0, 1, 1], [], []>} : vector<8x32xbf16>, vector<32x32xbf16>, vector<8x32xf32> -> vector<8x32xf32>
    %c0_45 = arith.constant 0 : index
    %c0_46 = arith.constant 0 : index
    %102 = vector.load %arg7[%c0_45, %c0_46] : memref<1x32xf32, #tpu.memory_space<vmem>>, vector<1x32xf32>
    %103 = vector.shape_cast %102 : vector<1x32xf32> to vector<32xf32>
    %104 = vector.shape_cast %103 : vector<32xf32> to vector<1x32xf32>
    %105 = vector.broadcast %104 : vector<1x32xf32> to vector<8x32xf32>
    %106 = arith.addf %101, %105 : vector<8x32xf32>
    %107 = arith.addf %14, %106 : vector<8x32xf32>
    %c0_47 = arith.constant 0 : index
    %c0_48 = arith.constant 0 : index
    %108 = vector.load %arg10[%c0_47, %c0_48] : memref<1x32xf32, #tpu.memory_space<vmem>>, vector<1x32xf32>
    %109 = vector.shape_cast %108 : vector<1x32xf32> to vector<32xf32>
    %c0_49 = arith.constant 0 : index
    %c0_50 = arith.constant 0 : index
    %110 = vector.load %arg11[%c0_49, %c0_50] : memref<1x32xf32, #tpu.memory_space<vmem>>, vector<1x32xf32>
    %111 = vector.shape_cast %110 : vector<1x32xf32> to vector<32xf32>
    %cst_51 = arith.constant dense<0.000000e+00> : vector<8xf32>
    %112 = vector.multi_reduction <add>, %107, %cst_51 [1] : vector<8x32xf32> to vector<8xf32>
    %113 = vector.shape_cast %112 : vector<8xf32> to vector<8x1xf32>
    %cst_52 = arith.constant 3.200000e+01 : f32
    %114 = vector.broadcast %cst_52 : f32 to vector<8x1xf32>
    %115 = arith.divf %113, %114 : vector<8x1xf32>
    %116 = vector.broadcast %115 : vector<8x1xf32> to vector<8x32xf32>
    %117 = arith.subf %107, %116 : vector<8x32xf32>
    %118 = arith.mulf %117, %117 : vector<8x32xf32>
    %cst_53 = arith.constant dense<0.000000e+00> : vector<8xf32>
    %119 = vector.multi_reduction <add>, %118, %cst_53 [1] : vector<8x32xf32> to vector<8xf32>
    %120 = vector.shape_cast %119 : vector<8xf32> to vector<8x1xf32>
    %cst_54 = arith.constant 0.0322580636 : f32
    %121 = vector.broadcast %cst_54 : f32 to vector<8x1xf32>
    %122 = arith.mulf %120, %121 : vector<8x1xf32>
    %123 = math.sqrt %122 : vector<8x1xf32>
    %cst_55 = arith.constant 9.99999997E-7 : f32
    %124 = vector.broadcast %cst_55 : f32 to vector<8x1xf32>
    %125 = arith.addf %123, %124 : vector<8x1xf32>
    %126 = tpu.reciprocal %125 : vector<8x1xf32> -> vector<8x1xf32>
    %127 = vector.shape_cast %109 : vector<32xf32> to vector<1x32xf32>
    %128 = vector.broadcast %127 : vector<1x32xf32> to vector<8x32xf32>
    %129 = arith.mulf %128, %117 : vector<8x32xf32>
    %130 = vector.broadcast %126 : vector<8x1xf32> to vector<8x32xf32>
    %131 = arith.mulf %129, %130 : vector<8x32xf32>
    %132 = vector.shape_cast %111 : vector<32xf32> to vector<1x32xf32>
    %133 = vector.broadcast %132 : vector<1x32xf32> to vector<8x32xf32>
    %134 = arith.addf %131, %133 : vector<8x32xf32>
    %135 = arith.truncf %134 : vector<8x32xf32> to vector<8x32xbf16>
    %c0_56 = arith.constant 0 : index
    %c0_57 = arith.constant 0 : index
    %136 = vector.load %arg12[%c0_56, %c0_57] : memref<32x128xbf16, #tpu.memory_space<vmem>>, vector<32x128xbf16>
    %cst_58 = arith.constant dense<0.000000e+00> : vector<8x128xf32>
    %137 = tpu.matmul %135, %136, %cst_58 {dimension_numbers = #tpu.dot_dimension_numbers<[1], [0], [0], [1], [0, 0, 1, 1], [], []>} : vector<8x32xbf16>, vector<32x128xbf16>, vector<8x128xf32> -> vector<8x128xf32>
    %c0_59 = arith.constant 0 : index
    %c0_60 = arith.constant 0 : index
    %138 = vector.load %arg13[%c0_59, %c0_60] : memref<1x128xf32, #tpu.memory_space<vmem>>, vector<1x128xf32>
    %139 = vector.shape_cast %138 : vector<1x128xf32> to vector<128xf32>
    %140 = vector.shape_cast %139 : vector<128xf32> to vector<1x128xf32>
    %141 = vector.broadcast %140 : vector<1x128xf32> to vector<8x128xf32>
    %142 = arith.addf %137, %141 : vector<8x128xf32>
    %143 = arith.truncf %142 : vector<8x128xf32> to vector<8x128xbf16>
    %cst_61 = arith.constant 5.000000e-01 : bf16
    %144 = vector.broadcast %cst_61 : bf16 to vector<8x128xbf16>
    %145 = arith.mulf %144, %143 : vector<8x128xbf16>
    %cst_62 = arith.constant 4.467770e-02 : bf16
    %146 = vector.broadcast %cst_62 : bf16 to vector<8x128xbf16>
    %147 = arith.mulf %146, %143 : vector<8x128xbf16>
    %148 = arith.mulf %147, %143 : vector<8x128xbf16>
    %149 = arith.mulf %148, %143 : vector<8x128xbf16>
    %150 = arith.addf %143, %149 : vector<8x128xbf16>
    %cst_63 = arith.constant 7.968750e-01 : bf16
    %151 = vector.broadcast %cst_63 : bf16 to vector<8x128xbf16>
    %152 = arith.mulf %151, %150 : vector<8x128xbf16>
    %153 = math.tanh %152 : vector<8x128xbf16>
    %cst_64 = arith.constant 1.000000e+00 : bf16
    %154 = vector.broadcast %cst_64 : bf16 to vector<8x128xbf16>
    %155 = arith.addf %154, %153 : vector<8x128xbf16>
    %156 = arith.mulf %145, %155 : vector<8x128xbf16>
    %c0_65 = arith.constant 0 : index
    %c0_66 = arith.constant 0 : index
    %157 = vector.load %arg14[%c0_65, %c0_66] : memref<128x32xbf16, #tpu.memory_space<vmem>>, vector<128x32xbf16>
    %cst_67 = arith.constant dense<0.000000e+00> : vector<8x32xf32>
    %158 = tpu.matmul %156, %157, %cst_67 {dimension_numbers = #tpu.dot_dimension_numbers<[1], [0], [0], [1], [0, 0, 1, 1], [], []>} : vector<8x128xbf16>, vector<128x32xbf16>, vector<8x32xf32> -> vector<8x32xf32>
    %c0_68 = arith.constant 0 : index
    %c0_69 = arith.constant 0 : index
    %159 = vector.load %arg15[%c0_68, %c0_69] : memref<1x32xf32, #tpu.memory_space<vmem>>, vector<1x32xf32>
    %160 = vector.shape_cast %159 : vector<1x32xf32> to vector<32xf32>
    %161 = vector.shape_cast %160 : vector<32xf32> to vector<1x32xf32>
    %162 = vector.broadcast %161 : vector<1x32xf32> to vector<8x32xf32>
    %163 = arith.addf %158, %162 : vector<8x32xf32>
    %164 = arith.addf %107, %163 : vector<8x32xf32>
    %c0_70 = arith.constant 0 : index
    %c0_71 = arith.constant 0 : index
    %c0_72 = arith.constant 0 : index
    %165 = vector.load %arg16[%c0_70, %c0_71, %c0_72] : memref<1x8x32xf32, #tpu.memory_space<vmem>>, vector<1x8x32xf32>
    %166 = vector.shape_cast %165 : vector<1x8x32xf32> to vector<8x32xf32>
    %167 = vector.shape_cast %164 : vector<8x32xf32> to vector<1x8x32xf32>
    tpu.vector_store %arg16[%c0_70, %c0_71, %c0_72], %167 {strides = array<i32>} : memref<1x8x32xf32, #tpu.memory_space<vmem>>, vector<1x8x32xf32>,
    return
  }
  func.func @transform_0(%arg0: i32, %arg1: i32) -> (i32, i32, i32) {
    %c0_i32 = arith.constant 0 : i32
    %c0_i32_0 = arith.constant 0 : i32
    %c0_i32_1 = arith.constant 0 : i32
    return %arg0, %c0_i32, %c0_i32_0 : i32, i32, i32
  }
  func.func @transform_1(%arg0: i32, %arg1: i32) -> (i32, i32, i32) {
    %c0_i32 = arith.constant 0 : i32
    %c0_i32_0 = arith.constant 0 : i32
    %c0_i32_1 = arith.constant 0 : i32
    return %arg0, %c0_i32, %c0_i32_0 : i32, i32, i32
  }
  func.func @transform_2(%arg0: i32, %arg1: i32) -> (i32, i32) {
    %c0_i32 = arith.constant 0 : i32
    %c0_i32_0 = arith.constant 0 : i32
    %c0_i32_1 = arith.constant 0 : i32
    return %c0_i32, %c0_i32_0 : i32, i32
  }
  func.func @transform_3(%arg0: i32, %arg1: i32) -> (i32, i32) {
    %c0_i32 = arith.constant 0 : i32
    %c0_i32_0 = arith.constant 0 : i32
    %c0_i32_1 = arith.constant 0 : i32
    return %c0_i32, %c0_i32_0 : i32, i32
  }
  func.func @transform_4(%arg0: i32, %arg1: i32) -> (i32, i32) {
    %c0_i32 = arith.constant 0 : i32
    %c0_i32_0 = arith.constant 0 : i32
    %c0_i32_1 = arith.constant 0 : i32
    return %c0_i32, %c0_i32_0 : i32, i32
  }
  func.func @transform_5(%arg0: i32, %arg1: i32) -> (i32, i32) {
    %c0_i32 = arith.constant 0 : i32
    %c0_i32_0 = arith.constant 0 : i32
    %c0_i32_1 = arith.constant 0 : i32
    return %c0_i32, %c0_i32_0 : i32, i32
  }
  func.func @transform_6(%arg0: i32, %arg1: i32) -> (i32, i32) {
    %c0_i32 = arith.constant 0 : i32
    %c0_i32_0 = arith.constant 0 : i32
    %c0_i32_1 = arith.constant 0 : i32
    return %c0_i32, %c0_i32_0 : i32, i32
  }
  func.func @transform_7(%arg0: i32, %arg1: i32) -> (i32, i32) {
    %c0_i32 = arith.constant 0 : i32
    %c0_i32_0 = arith.constant 0 : i32
    %c0_i32_1 = arith.constant 0 : i32
    return %c0_i32, %c0_i32_0 : i32, i32
  }
  func.func @transform_8(%arg0: i32, %arg1: i32) -> (i32, i32) {
    %c0_i32 = arith.constant 0 : i32
    %c0_i32_0 = arith.constant 0 : i32
    %c0_i32_1 = arith.constant 0 : i32
    return %c0_i32, %c0_i32_0 : i32, i32
  }
  func.func @transform_9(%arg0: i32, %arg1: i32) -> (i32, i32) {
    %c0_i32 = arith.constant 0 : i32
    %c0_i32_0 = arith.constant 0 : i32
    %c0_i32_1 = arith.constant 0 : i32
    return %c0_i32, %c0_i32_0 : i32, i32
  }
  func.func @transform_10(%arg0: i32, %arg1: i32) -> (i32, i32) {
    %c0_i32 = arith.constant 0 : i32
    %c0_i32_0 = arith.constant 0 : i32
    %c0_i32_1 = arith.constant 0 : i32
    return %c0_i32, %c0_i32_0 : i32, i32
  }
  func.func @transform_11(%arg0: i32, %arg1: i32) -> (i32, i32) {
    %c0_i32 = arith.constant 0 : i32
    %c0_i32_0 = arith.constant 0 : i32
    %c0_i32_1 = arith.constant 0 : i32
    return %c0_i32, %c0_i32_0 : i32, i32
  }
  func.func @transform_12(%arg0: i32, %arg1: i32) -> (i32, i32) {
    %c0_i32 = arith.constant 0 : i32
    %c0_i32_0 = arith.constant 0 : i32
    %c0_i32_1 = arith.constant 0 : i32
    return %c0_i32, %c0_i32_0 : i32, i32
  }
  func.func @transform_13(%arg0: i32, %arg1: i32) -> (i32, i32) {
    %c0_i32 = arith.constant 0 : i32
    %c0_i32_0 = arith.constant 0 : i32
    %c0_i32_1 = arith.constant 0 : i32
    return %c0_i32, %c0_i32_0 : i32, i32
  }
  func.func @transform_14(%arg0: i32, %arg1: i32) -> (i32, i32, i32) {
    %c0_i32 = arith.constant 0 : i32
    %c0_i32_0 = arith.constant 0 : i32
    return %arg0, %arg1, %c0_i32 : i32, i32, i32
  }
}

</mosaic_0001>

<bundles_post_ra>
// kernel: tpu_custom_call.1
= control target key start
LH: loop header
LB: loop body
LE: loop exit
PB: predicated region body
PF: predicated region fallthrough
CT: control target
= control target key end

     0   :  { %s2279_s0 = inlined_call_operand.vmem [shape: f32[2,8,32], index: 0, kind: input, shape index: {}]   ;;  %s2280_s1 = inlined_call_operand.vmem [shape: s32[2,1,8], index: 1, kind: input, shape index: {}]   ;;  %s2281_s2 = inlined_call_operand.vmem [shape: bf16[32,96], index: 2, kind: input, shape index: {}]   ;;  %s2282_s3 = inlined_call_operand.vmem [shape: f32[1,96], index: 3, kind: input, shape index: {}]   ;;  %s2283_s4 = inlined_call_operand.vmem [shape: bf16[32,32], index: 4, kind: input, shape index: {}]   ;;  %s2284_s5 = inlined_call_operand.vmem [shape: f32[1,32], index: 5, kind: input, shape index: {}]   ;;  %s2285_s6 = inlined_call_operand.vmem [shape: f32[1,32], index: 6, kind: input, shape index: {}]   ;;  %s2286_s7 = inlined_call_operand.vmem [shape: f32[1,32], index: 7, kind: input, shape index: {}]   ;;  %s2287_s8 = inlined_call_operand.vmem [shape: f32[1,32], index: 8, kind: input, shape index: {}]   ;;  %s2288_s9 = inlined_call_operand.vmem [shape: f32[1,32], index: 9, kind: input, shape index: {}]   ;;  %s2289_s10 = inlined_call_operand.vmem [shape: bf16[32,128], index: 10, kind: input, shape index: {}]   ;;  %s2290_s11 = inlined_call_operand.vmem [shape: f32[1,128], index: 11, kind: input, shape index: {}]   ;;  %s2291_s12 = inlined_call_operand.vmem [shape: bf16[128,32], index: 12, kind: input, shape index: {}]   ;;  %s2292_s13 = inlined_call_operand.vmem [shape: f32[1,32], index: 13, kind: input, shape index: {}]   ;;  %s2293_s14 = inlined_call_operand.hbm [shape: f32[2,8,32], index: 14, kind: output, shape index: {}]  }
   0x1   :  { %2295 = sst [smem:[#allocation8_spill]] %s2279_s0 }
   0x2   :  { %2296 = sst [smem:[#allocation9_spill]] %s2280_s1 }
   0x3   :  { %2297 = sst [smem:[#allocation10_spill]] %s2281_s2 }
   0x4   :  { %2298 = sst [smem:[#allocation11_spill]] %s2282_s3 }
   0x5   :  { %19 = vsyncpa [#allocation5], 0 }
   0x6   :  { %21 = vsyncpa [#allocation5 + $0x1], 0  ;;  %s1989_s29 = smov 0   ;;  %s1991_s30 = smov 0  }
   0x7   :  { %s1993_s15 = smov 0   ;;  %s1995_s16 = smov 0  }
   0x8   :  { %s1997_s17 = smov 0   ;;  %s1999_s18 = smov 0  }
   0x9 LB: > { %s1516_s19 = sadd.s32 4294967295, %s1895_s18   ;;  %s1517_s20 = sadd.s32 4294967294, %s1895_s18   ;;  %s1895_s18 = sphi %s1999_s18, %s27_s18   ;;  %s1891_s17 = sphi %s1997_s17, %s2311_s17   ;;  %s1887_s16 = sphi %s1995_s16, %s2310_s16   ;;  %s1883_s15 = sphi %s1993_s15, %s2309_s15   ;;  %s1879_s30 = sphi %s1991_s30, %s2308_s30   ;;  %s1875_s29 = sphi %s1989_s29, %s2307_s29  }
   0xa   : > { %s39_s21 = sadd.s32 1, %s1891_s17  ;;  %s352_s22 = sadd.s32 1, %s1883_s15 }
   0xb   : > { %p41_p0 = scmp.ge.s32.totalorder %s39_s21, 2  ;;  %p362_p1 = scmp.ne.s32.totalorder %s1883_s15, %s1879_s30 }
   0xc   : > { %p363_p2 = scmp.eq.s32.totalorder %s1516_s19, 1  ;;  %p368_p3 = scmp.ne.s32.totalorder %s1879_s30, %s1875_s29 }
   0xd   : > { %s2313_s21 = smov (%p41_p0, %s39_s21), 0  ;;  %p369_p5 = scmp.eq.s32.totalorder %s1517_s20, 1 }
   0xe   : > { %2299 = sst [smem:[#allocation7_spill]] %s2313_s21  ;;  %p2029_p4 = por %p363_p2, %p362_p1 }
   0xf   : > { %s347_s24 = ssub.s32 %s1891_s17, %s2313_s21  ;;  %p1520_p6 = scmp.ge.s32.totalorder %s1895_s18, 1 }
  0x10   : > { %p350_p7 = scmp.eq.s32.totalorder %s347_s24, 0  ;;  %p2036_p8 = por %p369_p5, %p368_p3 }
  0x11   : > { %p436_p9 = scmp.lt.s32.totalorder %s1895_s18, 3 }
  0x12   : > { %s2042_s26 = scalar_select %p350_p7, %s1883_s15, %s352_s22  }
  0x13   : > { %p437_p10 = pnand %p1520_p6, %p436_p9 }
  0x14   : > { %p484_p11 = scmp.lt.s32.totalorder (!%p437_p10), %s1887_s16, 1  ;;  %v1897_v0 = vmov (!%p437_p10), 0.0   ;;  %vm503_vm0 = vcmask (!%p437_p10), 261120   ;;  %s2302_s0 = sld [smem:[#allocation8_spill]] (!%p437_p10)  ;;  %vm1898_vm1 = vmmov (!%p437_p10), 0   ;;  %vm607_vm4 = vcmask (!%p437_p10), 781312  }
  0x15   : > { %440 = sbr.rel (%p437_p10) target bundleno = 2653 (0xa5d), region = 76  ;;  %1607 = vmatprep.subr.bf16.mxu0 (!%p437_p10), %v1897_v0  ;;  %1627 = vmatprep.subr.bf16.mxu1 (!%p437_p10), %v1897_v0  ;;  %s2303_s2 = sld [smem:[#allocation10_spill]] (!%p437_p10)  ;;  %v1523_v18 = vld [vmem:[%s2285_s6] ss:$0 sm:$0xff] (!%p437_p10)  ;;  %vm632_vm5 = vcmask (!%p437_p10), 64512   ;;  %v622_v51 = vlaneseq (!%p437_p10)  ;;  %vm696_vm7 = vcmask (!%p437_p10), 1043456  }
  0x16   : > { %1611 = vmatprep.mubr.msk.bf16.mxu0 (!%p437_p10), %vm1898_vm1, %v1897_v0  ;;  %1629 = vmatprep.mubr.msk.bf16.mxu1 (!%p437_p10), %vm1898_vm1, %v1897_v0  ;;  %v1524_v21 = vld [vmem:[%s2286_s7] ss:$0 sm:$0xff] (!%p437_p10)  ;;  %s2304_s3 = sld [smem:[#allocation11_spill]] (!%p437_p10)  ;;  %s1899_s21 = smov (!%p437_p10), 120   ;;  %vm741_vm8 = vcmask (!%p437_p10), 60416   ;;  %vm868_vm9 = vcmask (!%p437_p10), 126016  }
  0x17   : > { %s1900_s20 = smov (!%p437_p10), 96   ;;  %s1902_s24 = smov (!%p437_p10), 80   ;;  %v623_v53 = vshrl.u32 (!%p437_p10), %v622_v51, 7  ;;  %vm995_vm10 = vcmask (!%p437_p10), 191616   ;;  %vm1122_vm11 = vcmask (!%p437_p10), 257216  }
  0x18   : > { %s1904_s19 = smov (!%p437_p10), 72   ;;  %s2305_s1 = sld [smem:[#allocation9_spill]] (!%p437_p10) }
  0x19   : > { %v624_v54 = vsub.s32 (!%p437_p10), 0, %v623_v53 }
  0x1b   : > { %v1770_v8 = vld [vmem:[%s2303_s2] sm:$0xff] (!%p437_p10)   ;;  %v1771_v9 = vld [vmem:[%s2303_s2 + $0x8] sm:$0xff] (!%p437_p10)  }
  0x1c   : > { %s2048_s27 = scalar_select %p484_p11, %s1887_s16, 1  ;;  %1608 = vmatpush3.bf16.msra.mxu0 %v1770_v8  ;;  %v1525_v25 = vld [vmem:[%s2304_s3] ss:$0 sm:$0xff] }
  0x1d   : > { %1609 = vmatprep.subr.bf16.mxu0 %v1897_v0 }
  0x1e   : > { %s1522_s28 = sshll.u32 %s2048_s27, 3 }
  0x1f   : > { %s487_s22 = scalar_lea.vmem %s2302_s0, %s1522_s28  ;;  %s1903_s28 = smov 112  }
  0x20   : > { %v2054_v1 = vld [vmem:[%s487_s22] sm:$0xff]  ;;  %1610 = vmatpush3.bf16.msra.mxu0 %v1771_v9  ;;  %s1901_s22 = smov 88  }
  0x21   : > { %v504_v2 = vsel %vm503_vm0, %v2054_v1, 0.0  ;;  %1615 = vmatprep.subr.bf16.mxu0 %v1897_v0 }
  0x22   : > { %505 = vadd.xlane.f32.xlu0 %v504_v2 }
  0xaf   : > { %v506_v3 = vpop.xlane.xlu0 %505 }
  0xb0   : > { %v508_v4 = vmul.f32 0.03125, %v506_v3 }
  0xb2   : > { %v509_v5 = vsub.f32 %v2054_v1, %v508_v4 }
  0xb4   : > { %v510_v6 = vmul.f32 %v509_v5, %v509_v5  ;;  %v530_v19 = vmul.f32 %v1523_v18, %v509_v5 }
  0xb6   : > { %v511_v7 = vsel %vm503_vm0, %v510_v6, 0.0 }
  0xb7   : > { %512 = vadd.xlane.f32.xlu0 %v511_v7 }
 0x144   : > { %v513_v10 = vpop.xlane.xlu0 %512 }
 0x145   : > { %v514_v11 = vmul.f32 0.032258064, %v513_v10 }
 0x147   : > { %1791 = vrsqrt.f32 %v514_v11  ;;  %vm517_vm2 = vcmp.eq.f32.partialorder %v514_v11, inf  ;;  %v520_v14 = vand.u32 2147483648, %v514_v11  ;;  %vm519_vm3 = vcmp.eq.f32.partialorder %v514_v11, 0.0 }
 0x151   : > { %v1792_v12 = vpop.eup %1791 }
 0x152   : > { %v516_v13 = vmul.f32 %v1792_v12, %v514_v11 }
 0x154   : > { %v518_v15 = vsel %vm517_vm2, %v514_v11, %v516_v13 }
 0x155   : > { %v521_v16 = vsel %vm519_vm3, %v520_v14, %v518_v15 }
 0x156   : > { %v522_v17 = vadd.f32 1e-06, %v521_v16 }
 0x158   : > { %1793 = vrcp.f32 %v522_v17 }
 0x162   : > { %v1794_v20 = vpop.eup %1793 }
 0x163   : > { %v531_v22 = vmul.f32 %v1794_v20, %v530_v19 }
 0x165   : > { %v538_v23 = vadd.f32 %v1524_v21, %v531_v22 }
 0x167   : > { %v539_v24 = vpack.c.bf16 %v538_v23, %v538_v23 }
 0x169   : > { %1612 = vmatmul.mubr.msk.bf16.vlgmr.msra.gmra.mrb[0].mxu0 %vm503_vm0, %v539_v24 }
 0x16a   : > { %1617 = vmatprep.mubr.msk.bf16.mxu0 %vm1898_vm1, %v1897_v0 }
 0x23c   : > { %v600_v26 = vpop.f32.mrb[0].mxu0 }
 0x23d   : > { %v601_v27 = vadd.f32 %v1525_v25, %v600_v26  ;;  %v1613_v28 = vpop.f32.mrb[1].mxu0 }
 0x23e   : > { %v603_v29 = vpop.f32.mrb[2].mxu0 }
 0x23f   : > { %v606_v30 = vpack.c.bf16 %v601_v27, %v601_v27  ;;  %v1614_v31 = vpop.f32.mrb[3].mxu0 }
 0x241   : > { %608 = vst.msk [vmem:[#allocation2] sm:$0xf] %vm607_vm4, %v606_v30 }
 0x248   : > { %v1772_v32 = vld [vmem:[#allocation2] ss:$0 sps:$4 sm:$0xff]  }
 0x249   : > { %v2084_v33 = vld [vmem:[#allocation2] ss:$0 sps:$4 sm:$0xff]   ;;  %748 = vrot.lane.b32.xlu0 %v1772_v32, %s1899_s21  ;;  %s1905_s21 = smov 104  }
 0x24a   : > { %630 = vrot.lane.b32.xlu1 %v2084_v33, %s1900_s20  ;;  %v2087_v34 = vld [vmem:[#allocation2] ss:$0 sps:$4 sm:$0xff]   ;;  %s1910_s20 = smov 8  }
 0x24b   : > { %v2090_v35 = vld [vmem:[#allocation2] ss:$0 sps:$4 sm:$0xff]  }
 0x24c   : > { %v1776_v36 = vld [vmem:[#allocation2] ss:$0 sps:$4 sm:$0xff]  }
 0x24d   : > { %v2093_v37 = vld [vmem:[#allocation2] ss:$0 sps:$4 sm:$0xff]  }
 0x24e   : > { %753 = vrot.lane.b32.xlu1 %v2087_v34, %s1901_s22  ;;  %v1778_v38 = vld [vmem:[#allocation2] ss:$0 sps:$4 sm:$0xff]   ;;  %s1567_s22 = sshll.u32 %s1887_s16, 7 }
 0x24f   : > { %v619_v44 = vld [vmem:[#allocation2] sm:$0xf]  ;;  %s2231_s2 = scalar_lea.hbm %s2293_s14, %s1567_s22 }
 0x252   : > { %880 = vrot.lane.b32.xlu1 %v2090_v35, %s1902_s24  ;;  %s490_s24 = scalar_lea.vmem %s2305_s1, %s2048_s27  ;;  %s1906_s27 = smov 64  }
 0x253   : > { %v609_v52 = vld [vmem:[%s490_s24] sm:$0x1] }
 0x254   : > { %vm610_vm6 = vcmp.eq.s32.totalorder %v609_v52, 0 }
 0x255   : > { %v611_v55 = vsel %vm610_vm6, -1e+09, %v1897_v0 }
 0x256   : > { %875 = vrot.lane.b32.xlu1 %v1776_v36, %s1903_s28  ;;  %v625_v56 = vrot.slane %v611_v55, %v624_v54  ;;  %s1907_s28 = smov 56  }
 0x25a   : > { %1007 = vrot.lane.b32.xlu1 %v2093_v37, %s1904_s19  ;;  %s1908_s19 = smov 48  }
 0x25e   : > { %1002 = vrot.lane.b32.xlu1 %v1778_v38, %s1905_s21  ;;  %s1909_s21 = smov 40  }
 0x2bb   : > { %v749_v45 = vpop.permute.xlu0 %748 }
 0x2bc   : > { %v631_v39 = vpop.permute.xlu1 %630 }
 0x2bd   : > { %v637_v40 = vsel %vm632_vm5, %v631_v39, 0 }
 0x2be   : > { %1616 = vmatpush3.bf16.xpose.msra.mxu0 %v637_v40 }
 0x2bf   : > { %1621 = vmatprep.subr.bf16.mxu0 %v1897_v0 }
 0x2c0   : > { %v754_v41 = vpop.permute.xlu1 %753 }
 0x2c1   : > { %v759_v42 = vsel %vm632_vm5, %v754_v41, 0 }
 0x2c2   : > { %1628 = vmatpush3.bf16.xpose.msra.mxu1 %v759_v42 }
 0x2c3   : > { %1639 = vmatprep.subr.bf16.mxu1 %v1897_v0 }
 0x2c4   : > { %v881_v43 = vpop.permute.xlu1 %880 }
 0x2c5   : > { %1618 = vmatmul.mubr.msk.bf16.vlgmr.msra.gmra.mrb[4].mxu0 %vm632_vm5, %v619_v44  ;;  %v886_v47 = vsel %vm632_vm5, %v881_v43, 0 }
 0x2c6   : > { %1623 = vmatprep.mubr.msk.bf16.mxu0 %vm1898_vm1, %v1897_v0 }
 0x2c8   : > { %v876_v46 = vpop.permute.xlu1 %875 }
 0x2c9   : > { %1630 = vmatmul.mubr.msk.bf16.vlgmr.msra.gmra.mrb[0].mxu1 %vm632_vm5, %v749_v45 }
 0x2ca   : > { %1640 = vmatpush3.bf16.xpose.msra.mxu1 %v886_v47  ;;  %1641 = vmatprep.mubr.msk.bf16.mxu1 %vm1898_vm1, %v1897_v0 }
 0x2cb   : > { %1651 = vmatprep.subr.bf16.mxu1 %v1897_v0 }
 0x2cc   : > { %v1008_v48 = vpop.permute.xlu1 %1007 }
 0x2cd   : > { %v1013_v49 = vsel %vm632_vm5, %v1008_v48, 0 }
 0x2d0   : > { %v1003_v50 = vpop.permute.xlu1 %1002 }
 0x2d1   : > { %1642 = vmatmul.mubr.msk.bf16.vlgmr.msra.gmra.mrb[4].mxu1 %vm632_vm5, %v876_v46 }
 0x2d2   : > { %1652 = vmatpush3.bf16.xpose.msra.mxu1 %v1013_v49  ;;  %1653 = vmatprep.mubr.msk.bf16.mxu1 %vm1898_vm1, %v1897_v0 }
 0x2d3   : > { %1663 = vmatprep.subr.bf16.mxu1 %v1897_v0 }
 0x2d9   : > { %1654 = vmatmul.mubr.msk.bf16.vlgmr.msra.gmra.mrb[8].mxu1 %vm632_vm5, %v1003_v50 }
 0x2da   : > { %1667 = vmatprep.mubr.msk.bf16.mxu1 %vm1898_vm1, %v1897_v0 }
 0x398   : > { %v673_v57 = vpop.f32.mrb[4].mxu0 }
 0x399   : > { %v674_v58 = vadd.f32 %v673_v57, %v625_v56  ;;  %v1619_v59 = vpop.f32.mrb[5].mxu0 }
 0x39a   : > { %v676_v60 = vpop.f32.mrb[6].mxu0 }
 0x39b   : > { %v1620_v61 = vpop.f32.mrb[7].mxu0  ;;  %v679_v62 = vsel %vm632_vm5, %v674_v58, -inf }
 0x39c   : > { %v795_v63 = vpop.f32.mrb[0].mxu1  ;;  %680 = vmax.xlane.f32.xlu1 %v679_v62 }
 0x39d   : > { %v796_v2 = vadd.f32 %v795_v63, %v625_v56  ;;  %v1631_v3 = vpop.f32.mrb[1].mxu1 }
 0x39e   : > { %v798_v4 = vpop.f32.mrb[2].mxu1 }
 0x39f   : > { %v1632_v5 = vpop.f32.mrb[3].mxu1  ;;  %v801_v6 = vsel %vm632_vm5, %v796_v2, -inf }
 0x3a0   : > { %802 = vmax.xlane.f32.xlu0 %v801_v6 }
 0x3a4   : > { %v922_v7 = vpop.f32.mrb[4].mxu1 }
 0x3a5   : > { %v923_v8 = vadd.f32 %v922_v7, %v625_v56  ;;  %v1643_v9 = vpop.f32.mrb[5].mxu1 }
 0x3a6   : > { %v925_v10 = vpop.f32.mrb[6].mxu1 }
 0x3a7   : > { %v1644_v11 = vpop.f32.mrb[7].mxu1  ;;  %v928_v12 = vsel %vm632_vm5, %v923_v8, -inf }
 0x3a8   : > { %929 = vmax.xlane.f32.xlu1 %v928_v12  ;;  %v1779_v11 = vld [vmem:[%s2283_s4] sm:$0xff]  }
 0x3a9   : > { %1664 = vmatpush3.bf16.msra.mxu1 %v1779_v11 }
 0x3aa   : > { %1665 = vmatprep.subr.bf16.mxu1 %v1897_v0 }
 0x3ac   : > { %v1049_v13 = vpop.f32.mrb[8].mxu1 }
 0x3ad   : > { %v1050_v14 = vadd.f32 %v1049_v13, %v625_v56  ;;  %v1655_v15 = vpop.f32.mrb[9].mxu1  ;;  %v1780_v13 = vld [vmem:[%s2283_s4 + $0x8] sm:$0xff]  }
 0x3ae   : > { %v1052_v16 = vpop.f32.mrb[10].mxu1  ;;  %1666 = vmatpush3.bf16.msra.mxu1 %v1780_v13 }
 0x3af   : > { %v1656_v17 = vpop.f32.mrb[11].mxu1  ;;  %v1055_v18 = vsel %vm632_vm5, %v1050_v14, -inf  ;;  %1679 = vmatprep.subr.bf16.mxu1 %v1897_v0 }
 0x3b0   : > { %1056 = vmax.xlane.f32.xlu0 %v1055_v18 }
 0x429   : > { %v681_v19 = vpop.xlane.xlu1 %680 }
 0x42a   : > { %v682_v20 = vsub.f32 %v674_v58, %v681_v19 }
 0x42c   : > { %v683_v21 = vmul.f32 1.442695, %v682_v20 }
 0x42d   : > { %v803_v22 = vpop.xlane.xlu0 %802 }
 0x42e   : > { %1795 = vpow2.f32 %v683_v21  ;;  %v804_v23 = vsub.f32 %v796_v2, %v803_v22 }
 0x430   : > { %v805_v24 = vmul.f32 1.442695, %v804_v23 }
 0x432   : > { %1797 = vpow2.f32 %v805_v24 }
 0x435   : > { %v930_v38 = vpop.xlane.xlu1 %929 }
 0x436   : > { %v931_v39 = vsub.f32 %v923_v8, %v930_v38 }
 0x438   : > { %v1796_v25 = vpop.eup %1795  ;;  %v932_v40 = vmul.f32 1.442695, %v931_v39 }
 0x439   : > { %v685_v26 = vsel %vm632_vm5, %v1796_v25, 0.0 }
 0x43a   : > { %686 = vadd.xlane.f32.xlu1 %v685_v26 }
 0x43c   : > { %v1798_v27 = vpop.eup %1797 }
 0x43d   : > { %v1057_v28 = vpop.xlane.xlu0 %1056  ;;  %v807_v29 = vsel %vm632_vm5, %v1798_v27, 0.0 }
 0x43e   : > { %v1058_v30 = vsub.f32 %v1050_v14, %v1057_v28  ;;  %808 = vadd.xlane.f32.xlu0 %v807_v29 }
 0x440   : > { %v1059_v31 = vmul.f32 1.442695, %v1058_v30 }
 0x442   : > { %1799 = vpow2.f32 %v1059_v31 }
 0x443   : > { %1801 = vpow2.f32 %v932_v40 }
 0x44b   : > { %691 = vrot.lane.b32.xlu1 %v2084_v33, %s1906_s27 }
 0x44c   : > { %v1800_v32 = vpop.eup %1799 }
 0x44d   : > { %v1061_v36 = vsel %vm632_vm5, %v1800_v32, 0.0  ;;  %v1802_v41 = vpop.eup %1801 }
 0x44e   : > { %1062 = vadd.xlane.f32.xlu0 %v1061_v36  ;;  %v934_v42 = vsel %vm632_vm5, %v1802_v41, 0.0 }
 0x464   : > { %813 = vrot.lane.b32.xlu0 %v2087_v34, %s1907_s28 }
 0x46f   : > { %935 = vadd.xlane.f32.xlu1 %v934_v42 }
 0x480   : > { %940 = vrot.lane.b32.xlu1 %v2090_v35, %s1908_s19  ;;  %s1911_s19 = smov 16  }
 0x484   : > { %1067 = vrot.lane.b32.xlu1 %v2093_v37, %s1909_s21  ;;  %s1912_s21 = smov 24  }
 0x4c7   : > { %v687_v33 = vpop.xlane.xlu1 %686 }
 0x4c8   : > { %1803 = vrcp.f32 %v687_v33 }
 0x4cb   : > { %v692_v43 = vpop.permute.xlu1 %691  ;;  %v809_v45 = vpop.xlane.xlu0 %808 }
 0x4cc   : > { %v698_v44 = vsel %vm696_vm7, %v692_v43, 0  ;;  %1805 = vrcp.f32 %v809_v45  ;;  %v1781_v43 = vld [vmem:[%s2289_s10] sm:$0xff]  }
 0x4cd   : > { %1622 = vmatpush3.bf16.msra.mxu0 %v698_v44 }
 0x4ce   : > { %1633 = vmatprep.subr.bf16.mxu0 %v1897_v0 }
 0x4d2   : > { %v1804_v34 = vpop.eup %1803 }
 0x4d3   : > { %v689_v46 = vmul.f32 %v1804_v34, %v1796_v25 }
 0x4d5   : > { %v690_v47 = vpack.c.bf16 %v689_v46, %v689_v46 }
 0x4d6   : > { %v1806_v35 = vpop.eup %1805 }
 0x4d7   : > { %1624 = vmatmul.mubr.msk.bf16.vlgmr.msra.gmra.mrb[8].mxu0 %vm632_vm5, %v690_v47  ;;  %v811_v48 = vmul.f32 %v1806_v35, %v1798_v27  ;;  %v1547_v27 = vld [vmem:[%s2284_s5] ss:$0 sm:$0xff] }
 0x4d8   : > { %1635 = vmatprep.mubr.msk.bf16.mxu0 %vm1898_vm1, %v1897_v0 }
 0x4d9   : > { %v812_v51 = vpack.c.bf16 %v811_v48, %v811_v48 }
 0x4db   : > { %v1063_v37 = vpop.xlane.xlu0 %1062 }
 0x4df   : > { %v814_v49 = vpop.permute.xlu0 %813 }
 0x4e0   : > { %v819_v50 = vsel %vm696_vm7, %v814_v49, 0  ;;  %v1551_v49 = vld [vmem:[%s2287_s8] ss:$0 sm:$0xff] }
 0x4e1   : > { %1634 = vmatpush3.bf16.msra.mxu0 %v819_v50 }
 0x4e2   : > { %1645 = vmatprep.subr.bf16.mxu0 %v1897_v0 }
 0x4e4   : > { %1636 = vmatmul.mubr.msk.bf16.vlgmr.msra.gmra.mrb[12].mxu0 %vm632_vm5, %v812_v51 }
 0x4e5   : > { %1647 = vmatprep.mubr.msk.bf16.mxu0 %vm1898_vm1, %v1897_v0 }
 0x4fc   : > { %v936_v52 = vpop.xlane.xlu1 %935 }
 0x4fd   : > { %1807 = vrcp.f32 %v936_v52  ;;  %v1552_v52 = vld [vmem:[%s2288_s9] ss:$0 sm:$0xff] }
 0x4fe   : > { %1809 = vrcp.f32 %v1063_v37 }
 0x500   : > { %v941_v53 = vpop.permute.xlu1 %940 }
 0x501   : > { %v946_v54 = vsel %vm696_vm7, %v941_v53, 0 }
 0x502   : > { %1646 = vmatpush3.bf16.msra.mxu0 %v946_v54 }
 0x503   : > { %1657 = vmatprep.subr.bf16.mxu0 %v1897_v0 }
 0x504   : > { %v1068_v57 = vpop.permute.xlu1 %1067 }
 0x505   : > { %v1073_v60 = vsel %vm696_vm7, %v1068_v57, 0  ;;  %v1784_v57 = vld [vmem:[%s2291_s12 + $0x8] sm:$0xff]  }
 0x507   : > { %v1808_v55 = vpop.eup %1807 }
 0x508   : > { %v938_v56 = vmul.f32 %v1808_v55, %v1802_v41  ;;  %v1810_v59 = vpop.eup %1809 }
 0x509   : > { %v1065_v61 = vmul.f32 %v1810_v59, %v1800_v32  ;;  %v1786_v59 = vld [vmem:[%s2291_s12 + $0x18] sm:$0xff]  }
 0x50a   : > { %v939_v58 = vpack.c.bf16 %v938_v56, %v938_v56  ;;  %v1783_v56 = vld [vmem:[%s2291_s12] sm:$0xff]  }
 0x50b   : > { %v1066_v62 = vpack.c.bf16 %v1065_v61, %v1065_v61  ;;  %v1788_v61 = vld [vmem:[%s2291_s12 + $0x28] sm:$0xff]  }
 0x50c   : > { %1648 = vmatmul.mubr.msk.bf16.vlgmr.msra.gmra.mrb[16].mxu0 %vm632_vm5, %v939_v58  ;;  %v1785_v58 = vld [vmem:[%s2291_s12 + $0x10] sm:$0xff]  }
 0x50d   : > { %1658 = vmatpush3.bf16.msra.mxu0 %v1073_v60  ;;  %1659 = vmatprep.mubr.msk.bf16.mxu0 %vm1898_vm1, %v1897_v0  ;;  %v1787_v60 = vld [vmem:[%s2291_s12 + $0x20] sm:$0xff]  }
 0x50e   : > { %1671 = vmatprep.subr.bf16.mxu0 %v1897_v0 }
 0x514   : > { %1660 = vmatmul.mubr.msk.bf16.vlgmr.msra.gmra.mrb[20].mxu0 %vm632_vm5, %v1066_v62  ;;  %v1789_v62 = vld [vmem:[%s2291_s12 + $0x30] sm:$0xff]  }
 0x515   : > { %1675 = vmatprep.mubr.msk.bf16.mxu0 %vm1898_vm1, %v1897_v0  ;;  %1672 = vmatpush3.bf16.msra.mxu0 %v1781_v43 }
 0x516   : > { %1673 = vmatprep.subr.bf16.mxu0 %v1897_v0 }
 0x5aa   : > { %v734_v63 = vpop.f32.mrb[8].mxu0 }
 0x5ab   : > { %v740_v2 = vpack.c.bf16 %v734_v63, %v734_v63  ;;  %v1625_v3 = vpop.f32.mrb[9].mxu0  ;;  %v1790_v63 = vld [vmem:[%s2291_s12 + $0x38] sm:$0xff]  }
 0x5ac   : > { %v737_v4 = vpop.f32.mrb[10].mxu0 }
 0x5ad   : > { %742 = vst.msk [vmem:[#allocation3] sm:$0xf] %vm741_vm8, %v740_v2  ;;  %v1626_v5 = vpop.f32.mrb[11].mxu0  ;;  %v1553_v2 = vld [vmem:[%s2290_s11] ss:$0 sm:$0xff] }
 0x5b7   : > { %v855_v6 = vpop.f32.mrb[12].mxu0 }
 0x5b8   : > { %v1570_v7 = vpack.c.bf16 %v855_v6, %v855_v6  ;;  %v1637_v8 = vpop.f32.mrb[13].mxu0 }
 0x5b9   : > { %v858_v9 = vpop.f32.mrb[14].mxu0 }
 0x5ba   : > { %865 = vrot.lane.b32.xlu0 %v1570_v7, %s1910_s20  ;;  %v1638_v10 = vpop.f32.mrb[15].mxu0  ;;  %s1913_s20 = smov [#allocation4]  }
 0x5bb   : > { %s1821_s0 = sshll.u32 %s1913_s20, 4  ;;  %s1822_s0 = int_to_ptr.vmem [resolvable:$false] %s1821_s0 }
 0x5bc   : > { %s1823_s3 = scalar_lea.vmem %s1822_s0, 256 }
 0x5df   : > { %v982_v12 = vpop.f32.mrb[16].mxu0 }
 0x5e0   : > { %v1571_v14 = vpack.c.bf16 %v982_v12, %v982_v12  ;;  %v1649_v15 = vpop.f32.mrb[17].mxu0 }
 0x5e1   : > { %v985_v16 = vpop.f32.mrb[18].mxu0 }
 0x5e2   : > { %992 = vrot.lane.b32.xlu1 %v1571_v14, %s1911_s19  ;;  %v1650_v17 = vpop.f32.mrb[19].mxu0  ;;  %s481_s19 = sand.u32 1, %s1879_s30  }
 0x5e3   : > { %v1557_v17 = vld [vmem:[%s2292_s13] ss:$0 sm:$0xff]  ;;  %s1421_s16 = scalar_lea.sflag [#allocation5], %s481_s19 }
 0x5e7   : > { %v1109_v18 = vpop.f32.mrb[20].mxu0 }
 0x5e8   : > { %v1572_v19 = vpack.c.bf16 %v1109_v18, %v1109_v18  ;;  %v1661_v20 = vpop.f32.mrb[21].mxu0 }
 0x5e9   : > { %v1112_v21 = vpop.f32.mrb[22].mxu0 }
 0x5ea   : > { %1119 = vrot.lane.b32.xlu0 %v1572_v19, %s1912_s21  ;;  %v1662_v22 = vpop.f32.mrb[23].mxu0  ;;  %s1521_s21 = sshll.u32 %s481_s19, 3 }
 0x5eb   : > { %s483_s24 = scalar_lea.vmem [#allocation4], %s1521_s21 }
 0x5ec   : > { %s1435_s27 = sshll.u32 %s483_s24, 4  ;;  %s2233_s27 = int_to_ptr.vmem [resolvable:$true] %s1435_s27 }
 0x5ed   : > { %s1817_s21 = scalar_lea.vmem %s2233_s27, 128  ;;  %p1824_p1 = scmp.lt.s32.totalorder %s2233_s27, %s1822_s0 }
 0x5ee   : > { %p1818_p12 = scmp.ne.s32.totalorder %s2233_s27, %s1817_s21  ;;  %p1825_p2 = scmp.lt.s32.totalorder %s1823_s3, %s1817_s21 }
 0x5f0   : > { %p1819_p13 = pnand %p1818_p12, %p2029_p4  ;;  %p1826_p3 = por %p1825_p2, %p1824_p1 }
 0x5f2   : > { %p1820_p0 = pneg %p1819_p13 }
 0x5f4   : > { %p1827_p5 = pnand %p1826_p3, %p1820_p0 }
 0x62c   : > { %v866_v23 = vpop.permute.xlu0 %865 }
 0x62d   : > { %869 = vst.msk [vmem:[#allocation3] sm:$0xf] %vm868_vm9, %v866_v23 }
 0x654   : > { %v993_v24 = vpop.permute.xlu1 %992 }
 0x655   : > { %996 = vst.msk [vmem:[#allocation3] sm:$0xf] %vm995_vm10, %v993_v24 }
 0x65c   : > { %v1120_v25 = vpop.permute.xlu0 %1119 }
 0x65d   : > { %1123 = vst.msk [vmem:[#allocation3] sm:$0xf] %vm1122_vm11, %v1120_v25 }
 0x664   : > { %v1124_v26 = vld [vmem:[#allocation3] sm:$0xf] }
 0x665   : > { %1668 = vmatmul.mubr.msk.bf16.vlgmr.msra.gmra.mrb[12].mxu1 %vm503_vm0, %v1124_v26 }
 0x666   : > { %1695 = vmatprep.mubr.msk.bf16.mxu1 %vm1898_vm1, %v1897_v0  ;;  %1680 = vmatpush3.bf16.msra.mxu1 %v1783_v56 }
 0x667   : > { %1681 = vmatprep.subr.bf16.mxu1 %v1897_v0 }
 0x66a   : > { %1682 = vmatpush3.bf16.msra.mxu1 %v1784_v57 }
 0x66b   : > { %1683 = vmatprep.subr.bf16.mxu1 %v1897_v0 }
 0x66e   : > { %1684 = vmatpush3.bf16.msra.mxu1 %v1785_v58 }
 0x66f   : > { %1685 = vmatprep.subr.bf16.mxu1 %v1897_v0 }
 0x672   : > { %1686 = vmatpush3.bf16.msra.mxu1 %v1786_v59 }
 0x673   : > { %1687 = vmatprep.subr.bf16.mxu1 %v1897_v0 }
 0x676   : > { %1688 = vmatpush3.bf16.msra.mxu1 %v1787_v60 }
 0x677   : > { %1689 = vmatprep.subr.bf16.mxu1 %v1897_v0 }
 0x67a   : > { %1690 = vmatpush3.bf16.msra.mxu1 %v1788_v61 }
 0x67b   : > { %1691 = vmatprep.subr.bf16.mxu1 %v1897_v0 }
 0x67e   : > { %1692 = vmatpush3.bf16.msra.mxu1 %v1789_v62 }
 0x67f   : > { %1693 = vmatprep.subr.bf16.mxu1 %v1897_v0 }
 0x682   : > { %1694 = vmatpush3.bf16.msra.mxu1 %v1790_v63 }
 0x738   : > { %v1186_v28 = vpop.f32.mrb[12].mxu1 }
 0x739   : > { %v1187_v29 = vadd.f32 %v1547_v27, %v1186_v28  ;;  %v1669_v30 = vpop.f32.mrb[13].mxu1 }
 0x73a   : > { %v1189_v31 = vpop.f32.mrb[14].mxu1 }
 0x73b   : > { %v2168_v32 = vadd.f32 %v1187_v29, %v2054_v1  ;;  %v1670_v36 = vpop.f32.mrb[15].mxu1  ;;  %v1782_v1 = vld [vmem:[%s2289_s10 + $0x8] sm:$0xff]  }
 0x73c   : > { %1674 = vmatpush3.bf16.msra.mxu0 %v1782_v1 }
 0x73d   : > { %v1195_v38 = vsel %vm503_vm0, %v2168_v32, 0.0 }
 0x73e   : > { %1196 = vadd.xlane.f32.xlu1 %v1195_v38 }
 0x7cb   : > { %v1197_v39 = vpop.xlane.xlu1 %1196 }
 0x7cc   : > { %v1199_v40 = vmul.f32 0.03125, %v1197_v39 }
 0x7ce   : > { %v1200_v41 = vsub.f32 %v2168_v32, %v1199_v40 }
 0x7d0   : > { %v1201_v42 = vmul.f32 %v1200_v41, %v1200_v41  ;;  %v1221_v50 = vmul.f32 %v1551_v49, %v1200_v41 }
 0x7d2   : > { %v1202_v33 = vsel %vm503_vm0, %v1201_v42, 0.0 }
 0x7d3   : > { %1203 = vadd.xlane.f32.xlu0 %v1202_v33 }
 0x860   : > { %v1204_v44 = vpop.xlane.xlu0 %1203 }
 0x861   : > { %v1205_v45 = vmul.f32 0.032258064, %v1204_v44 }
 0x863   : > { %1811 = vrsqrt.f32 %v1205_v45  ;;  %vm1208_vm12 = vcmp.eq.f32.partialorder %v1205_v45, inf  ;;  %v1211_v47 = vand.u32 2147483648, %v1205_v45  ;;  %vm1210_vm13 = vcmp.eq.f32.partialorder %v1205_v45, 0.0 }
 0x86d   : > { %v1812_v34 = vpop.eup %1811 }
 0x86e   : > { %v1207_v46 = vmul.f32 %v1812_v34, %v1205_v45 }
 0x870   : > { %v1209_v35 = vsel %vm1208_vm12, %v1205_v45, %v1207_v46 }
 0x871   : > { %v1212_v37 = vsel %vm1210_vm13, %v1211_v47, %v1209_v35 }
 0x872   : > { %v1213_v48 = vadd.f32 1e-06, %v1212_v37 }
 0x874   : > { %1813 = vrcp.f32 %v1213_v48 }
 0x87e   : > { %v1814_v51 = vpop.eup %1813 }
 0x87f   : > { %v1222_v53 = vmul.f32 %v1814_v51, %v1221_v50 }
 0x881   : > { %v1229_v54 = vadd.f32 %v1552_v52, %v1222_v53 }
 0x883   : > { %v1230_v55 = vpack.c.bf16 %v1229_v54, %v1229_v54 }
 0x885   : > { %1676 = vmatmul.mubr.msk.bf16.vlgmr.msra.gmra.mrb[24].mxu0 %vm503_vm0, %v1230_v55 }
 0x958   : > { %v1291_v3 = vpop.f32.mrb[24].mxu0 }
 0x959   : > { %v1292_v4 = vadd.f32 %v1553_v2, %v1291_v3  ;;  %v1677_v5 = vpop.f32.mrb[25].mxu0 }
 0x95a   : > { %v1294_v6 = vpop.f32.mrb[26].mxu0 }
 0x95b   : > { %v1297_v7 = vpack.c.bf16 %v1292_v4, %v1292_v4  ;;  %v1678_v8 = vpop.f32.mrb[27].mxu0 }
 0x95d   : > { %v1299_v9 = vmul.bf16 1027030327, %v1297_v7  ;;  %v1298_v14 = vmul.bf16 1056980736, %v1297_v7 }
 0x95f   : > { %v1300_v10 = vmul.bf16 %v1299_v9, %v1297_v7 }
 0x961   : > { %v1301_v11 = vmul.bf16 %v1300_v10, %v1297_v7 }
 0x963   : > { %v1302_v12 = vadd.bf16 %v1301_v11, %v1297_v7 }
 0x965   : > { %v1303_v13 = vmul.bf16 1061961548, %v1302_v12 }
 0x967   : > { %1815 = vtanh.bf16 %v1303_v13 }
 0x972   : > { %v1816_v0 = vpop.eup %1815 }
 0x973   : > { %v1305_v15 = vadd.bf16 1065369472, %v1816_v0 }
 0x975   : > { %v1306_v16 = vmul.bf16 %v1305_v15, %v1298_v14 }
 0x977   : > { %1696 = vmatmul.mubr.bf16.vlgmr.msra.gmra.mrb[16].mxu1 %v1306_v16 }
 0xa4a   : > { %v1412_v18 = vpop.f32.mrb[16].mxu1 }
 0xa4b   : > { %v1413_v19 = vadd.f32 %v1557_v17, %v1412_v18  ;;  %v1697_v20 = vpop.f32.mrb[17].mxu1 }
 0xa4c   : > { %v1415_v21 = vpop.f32.mrb[18].mxu1 }
 0xa4d   : > { %v1418_v22 = vadd.f32 %v1413_v19, %v2168_v32  ;;  %v1698_v23 = vpop.f32.mrb[19].mxu1 }
 0xa4f   : > { %1419 = vst.msk [vmem:[%s483_s24] sm:$0xff] %vm503_vm0, %v1418_v22 }
 0xa50   : > { %1830 = shalt.err (!%p1827_p5)
}
 0xa51   : > { %s1831_s1 = scalar_lea.hbm %s2231_s2, 128  ;;  %s1835_s24 = scalar_lea.hbm %s2293_s14, 256 }
 0xa52   : > { %p1832_p6 = scmp.ne.s32.totalorder %s2231_s2, %s1831_s1  ;;  %p1836_p10 = scmp.lt.u32.totalorder %s2231_s2, %s2293_s14 }
 0xa53   : > { %p1837_p11 = scmp.lt.u32.totalorder %s1835_s24, %s1831_s1  ;;  %p1839_p13 = scmp.lt.u32.totalorder %s1831_s1, %s2231_s2 }
 0xa54   : > { %p1833_p7 = pnand %p1832_p6, %p2029_p4 }
 0xa55   : > { %p1838_p12 = por %p1837_p11, %p1836_p10 }
 0xa56   : > { %p1834_p9 = pneg %p1833_p7 }
 0xa57   : > { %p1840_p0 = por %p1839_p13, %p1838_p12 }
 0xa59   : > { %p1841_p1 = pnand %p1840_p0, %p1834_p9 }
 0xa5b   : > { %1844 = shalt.err (!%p1841_p1)
}
 0xa5c   : > { %1699 = dma.vmem_to_hbm [thread:$0]  (%p2029_p4), %s2233_s27, 128, %s2231_s2, %s1421_s16  }
 0xa5d PF: > { %p1705_p2 = scmp.ge.s32.totalorder %s1895_s18, 2  ;;  %s1447_s3 = sand.u32 1, %s1875_s29  }
 0xa5e   : > { %s1448_s21 = scalar_lea.sflag [#allocation5], %s1447_s3 }
 0xa5f   : > { %p1702_p3 = pnand %p1705_p2, %p2036_p8 }
 0xa61   : > { %1870 = dma.done.wait (!%p1702_p3), %s1448_s21, 128  }
 0xa62   : > { %1872 = vsyncadd (!%p1702_p3), %s1448_s21, 4294967168  ;;  %s27_s18 = sadd.s32 1, %s1895_s18   ;;  %s2306_s23 = sld [smem:[#allocation7_spill]] }
 0xa63   : > { %p24_p5 = scmp.ge.s32.totalorder %s27_s18, 4   ;;  %s2307_s29 = smov %s1879_s30 }
 0xa64   : > { %s2308_s30 = smov %s1883_s15  ;;  %s2309_s15 = smov %s2042_s26 }
 0xa65   : > { %s2310_s16 = smov %s1891_s17  ;;  %26 = sbr.rel (!%p24_p5) target bundleno = 9 (0x9), region = 120 }
 0xa68   : > { %s2311_s17 = smov %s2306_s23 }
 0xa6c   :  { %1453 = vsyncpa [#allocation5], 1 }
 0xa6d   :  { %1455 = vsyncpa [#allocation5 + $0x1], 1 }

// kernel: tpu_custom_call.1
= control target key start
LH: loop header
LB: loop body
LE: loop exit
PB: predicated region body
PF: predicated region fallthrough
CT: control target
= control target key end

     0   :  { %s2279_s0 = inlined_call_operand.vmem [shape: f32[2,8,32], index: 0, kind: input, shape index: {}]   ;;  %s2280_s1 = inlined_call_operand.vmem [shape: s32[2,1,8], index: 1, kind: input, shape index: {}]   ;;  %s2281_s2 = inlined_call_operand.vmem [shape: bf16[32,96], index: 2, kind: input, shape index: {}]   ;;  %s2282_s3 = inlined_call_operand.vmem [shape: f32[1,96], index: 3, kind: input, shape index: {}]   ;;  %s2283_s4 = inlined_call_operand.vmem [shape: bf16[32,32], index: 4, kind: input, shape index: {}]   ;;  %s2284_s5 = inlined_call_operand.vmem [shape: f32[1,32], index: 5, kind: input, shape index: {}]   ;;  %s2285_s6 = inlined_call_operand.vmem [shape: f32[1,32], index: 6, kind: input, shape index: {}]   ;;  %s2286_s7 = inlined_call_operand.vmem [shape: f32[1,32], index: 7, kind: input, shape index: {}]   ;;  %s2287_s8 = inlined_call_operand.vmem [shape: f32[1,32], index: 8, kind: input, shape index: {}]   ;;  %s2288_s9 = inlined_call_operand.vmem [shape: f32[1,32], index: 9, kind: input, shape index: {}]   ;;  %s2289_s10 = inlined_call_operand.vmem [shape: bf16[32,128], index: 10, kind: input, shape index: {}]   ;;  %s2290_s11 = inlined_call_operand.vmem [shape: f32[1,128], index: 11, kind: input, shape index: {}]   ;;  %s2291_s12 = inlined_call_operand.vmem [shape: bf16[128,32], index: 12, kind: input, shape index: {}]   ;;  %s2292_s13 = inlined_call_operand.vmem [shape: f32[1,32], index: 13, kind: input, shape index: {}]   ;;  %s2293_s14 = inlined_call_operand.hbm [shape: f32[2,8,32], index: 14, kind: output, shape index: {}]  }
   0x1   :  { %2295 = sst [smem:[#allocation8_spill]] %s2279_s0 }
   0x2   :  { %2296 = sst [smem:[#allocation9_spill]] %s2280_s1 }
   0x3   :  { %2297 = sst [smem:[#allocation10_spill]] %s2281_s2 }
   0x4   :  { %2298 = sst [smem:[#allocation11_spill]] %s2282_s3 }
   0x5   :  { %19 = vsyncpa [#allocation5], 0 }
   0x6   :  { %21 = vsyncpa [#allocation5 + $0x1], 0  ;;  %s1989_s29 = smov 0   ;;  %s1991_s30 = smov 0  }
   0x7   :  { %s1993_s15 = smov 0   ;;  %s1995_s16 = smov 0  }
   0x8   :  { %s1997_s17 = smov 0   ;;  %s1999_s18 = smov 0  }
   0x9 LB: > { %s1516_s19 = sadd.s32 4294967295, %s1895_s18   ;;  %s1517_s20 = sadd.s32 4294967294, %s1895_s18   ;;  %s1895_s18 = sphi %s1999_s18, %s27_s18   ;;  %s1891_s17 = sphi %s1997_s17, %s2311_s17   ;;  %s1887_s16 = sphi %s1995_s16, %s2310_s16   ;;  %s1883_s15 = sphi %s1993_s15, %s2309_s15   ;;  %s1879_s30 = sphi %s1991_s30, %s2308_s30   ;;  %s1875_s29 = sphi %s1989_s29, %s2307_s29  }
   0xa   : > { %s39_s21 = sadd.s32 1, %s1891_s17  ;;  %s352_s22 = sadd.s32 1, %s1883_s15 }
   0xb   : > { %p41_p0 = scmp.ge.s32.totalorder %s39_s21, 2  ;;  %p362_p1 = scmp.ne.s32.totalorder %s1883_s15, %s1879_s30 }
   0xc   : > { %p363_p2 = scmp.eq.s32.totalorder %s1516_s19, 1  ;;  %p368_p3 = scmp.ne.s32.totalorder %s1879_s30, %s1875_s29 }
   0xd   : > { %s2313_s21 = smov (%p41_p0, %s39_s21), 0  ;;  %p369_p5 = scmp.eq.s32.totalorder %s1517_s20, 1 }
   0xe   : > { %2299 = sst [smem:[#allocation7_spill]] %s2313_s21  ;;  %p2029_p4 = por %p363_p2, %p362_p1 }
   0xf   : > { %s347_s24 = ssub.s32 %s1891_s17, %s2313_s21  ;;  %p1520_p6 = scmp.ge.s32.totalorder %s1895_s18, 1 }
  0x10   : > { %p350_p7 = scmp.eq.s32.totalorder %s347_s24, 0  ;;  %p2036_p8 = por %p369_p5, %p368_p3 }
  0x11   : > { %p436_p9 = scmp.lt.s32.totalorder %s1895_s18, 3 }
  0x12   : > { %s2042_s26 = scalar_select %p350_p7, %s1883_s15, %s352_s22  }
  0x13   : > { %p437_p10 = pnand %p1520_p6, %p436_p9 }
  0x14   : > { %p484_p11 = scmp.lt.s32.totalorder (!%p437_p10), %s1887_s16, 1  ;;  %v1897_v0 = vmov (!%p437_p10), 0.0   ;;  %vm503_vm0 = vcmask (!%p437_p10), 261120   ;;  %s2302_s0 = sld [smem:[#allocation8_spill]] (!%p437_p10)  ;;  %vm1898_vm1 = vmmov (!%p437_p10), 0   ;;  %vm607_vm4 = vcmask (!%p437_p10), 781312  }
  0x15   : > { %440 = sbr.rel (%p437_p10) target bundleno = 2653 (0xa5d), region = 76  ;;  %1607 = vmatprep.subr.bf16.mxu0 (!%p437_p10), %v1897_v0  ;;  %1627 = vmatprep.subr.bf16.mxu1 (!%p437_p10), %v1897_v0  ;;  %s2303_s2 = sld [smem:[#allocation10_spill]] (!%p437_p10)  ;;  %v1523_v18 = vld [vmem:[%s2285_s6] ss:$0 sm:$0xff] (!%p437_p10)  ;;  %vm632_vm5 = vcmask (!%p437_p10), 64512   ;;  %v622_v51 = vlaneseq (!%p437_p10)  ;;  %vm696_vm7 = vcmask (!%p437_p10), 1043456  }
  0x16   : > { %1611 = vmatprep.mubr.msk.bf16.mxu0 (!%p437_p10), %vm1898_vm1, %v1897_v0  ;;  %1629 = vmatprep.mubr.msk.bf16.mxu1 (!%p437_p10), %vm1898_vm1, %v1897_v0  ;;  %v1524_v21 = vld [vmem:[%s2286_s7] ss:$0 sm:$0xff] (!%p437_p10)  ;;  %s2304_s3 = sld [smem:[#allocation11_spill]] (!%p437_p10)  ;;  %s1899_s21 = smov (!%p437_p10), 120   ;;  %vm741_vm8 = vcmask (!%p437_p10), 60416   ;;  %vm868_vm9 = vcmask (!%p437_p10), 126016  }
  0x17   : > { %s1900_s20 = smov (!%p437_p10), 96   ;;  %s1902_s24 = smov (!%p437_p10), 80   ;;  %v623_v53 = vshrl.u32 (!%p437_p10), %v622_v51, 7  ;;  %vm995_vm10 = vcmask (!%p437_p10), 191616   ;;  %vm1122_vm11 = vcmask (!%p437_p10), 257216  }
  0x18   : > { %s1904_s19 = smov (!%p437_p10), 72   ;;  %s2305_s1 = sld [smem:[#allocation9_spill]] (!%p437_p10) }
  0x19   : > { %v624_v54 = vsub.s32 (!%p437_p10), 0, %v623_v53 }
  0x1b   : > { %v1770_v8 = vld [vmem:[%s2303_s2] sm:$0xff] (!%p437_p10)   ;;  %v1771_v9 = vld [vmem:[%s2303_s2 + $0x8] sm:$0xff] (!%p437_p10)  }
  0x1c   : > { %s2048_s27 = scalar_select %p484_p11, %s1887_s16, 1  ;;  %1608 = vmatpush3.bf16.msra.mxu0 %v1770_v8  ;;  %v1525_v25 = vld [vmem:[%s2304_s3] ss:$0 sm:$0xff] }
  0x1d   : > { %1609 = vmatprep.subr.bf16.mxu0 %v1897_v0 }
  0x1e   : > { %s1522_s28 = sshll.u32 %s2048_s27, 3 }
  0x1f   : > { %s487_s22 = scalar_lea.vmem %s2302_s0, %s1522_s28  ;;  %s1903_s28 = smov 112  }
  0x20   : > { %v2054_v1 = vld [vmem:[%s487_s22] sm:$0xff]  ;;  %1610 = vmatpush3.bf16.msra.mxu0 %v1771_v9  ;;  %s1901_s22 = smov 88  }
  0x21   : > { %v504_v2 = vsel %vm503_vm0, %v2054_v1, 0.0  ;;  %1615 = vmatprep.subr.bf16.mxu0 %v1897_v0 }
  0x22   : > { %505 = vadd.xlane.f32.xlu0 %v504_v2 }
  0xaf   : > { %v506_v3 = vpop.xlane.xlu0 %505 }
  0xb0   : > { %v508_v4 = vmul.f32 0.03125, %v506_v3 }
  0xb2   : > { %v509_v5 = vsub.f32 %v2054_v1, %v508_v4 }
  0xb4   : > { %v510_v6 = vmul.f32 %v509_v5, %v509_v5  ;;  %v530_v19 = vmul.f32 %v1523_v18, %v509_v5 }
  0xb6   : > { %v511_v7 = vsel %vm503_vm0, %v510_v6, 0.0 }
  0xb7   : > { %512 = vadd.xlane.f32.xlu0 %v511_v7 }
 0x144   : > { %v513_v10 = vpop.xlane.xlu0 %512 }
 0x145   : > { %v514_v11 = vmul.f32 0.032258064, %v513_v10 }
 0x147   : > { %1791 = vrsqrt.f32 %v514_v11  ;;  %vm517_vm2 = vcmp.eq.f32.partialorder %v514_v11, inf  ;;  %v520_v14 = vand.u32 2147483648, %v514_v11  ;;  %vm519_vm3 = vcmp.eq.f32.partialorder %v514_v11, 0.0 }
 0x151   : > { %v1792_v12 = vpop.eup %1791 }
 0x152   : > { %v516_v13 = vmul.f32 %v1792_v12, %v514_v11 }
 0x154   : > { %v518_v15 = vsel %vm517_vm2, %v514_v11, %v516_v13 }
 0x155   : > { %v521_v16 = vsel %vm519_vm3, %v520_v14, %v518_v15 }
 0x156   : > { %v522_v17 = vadd.f32 1e-06, %v521_v16 }
 0x158   : > { %1793 = vrcp.f32 %v522_v17 }
 0x162   : > { %v1794_v20 = vpop.eup %1793 }
 0x163   : > { %v531_v22 = vmul.f32 %v1794_v20, %v530_v19 }
 0x165   : > { %v538_v23 = vadd.f32 %v1524_v21, %v531_v22 }
 0x167   : > { %v539_v24 = vpack.c.bf16 %v538_v23, %v538_v23 }
 0x169   : > { %1612 = vmatmul.mubr.msk.bf16.vlgmr.msra.gmra.mrb[0].mxu0 %vm503_vm0, %v539_v24 }
 0x16a   : > { %1617 = vmatprep.mubr.msk.bf16.mxu0 %vm1898_vm1, %v1897_v0 }
 0x23c   : > { %v600_v26 = vpop.f32.mrb[0].mxu0 }
 0x23d   : > { %v601_v27 = vadd.f32 %v1525_v25, %v600_v26  ;;  %v1613_v28 = vpop.f32.mrb[1].mxu0 }
 0x23e   : > { %v603_v29 = vpop.f32.mrb[2].mxu0 }
 0x23f   : > { %v606_v30 = vpack.c.bf16 %v601_v27, %v601_v27  ;;  %v1614_v31 = vpop.f32.mrb[3].mxu0 }
 0x241   : > { %608 = vst.msk [vmem:[#allocation2] sm:$0xf] %vm607_vm4, %v606_v30 }
 0x248   : > { %v1772_v32 = vld [vmem:[#allocation2] ss:$0 sps:$4 sm:$0xff]  }
 0x249   : > { %v2084_v33 = vld [vmem:[#allocation2] ss:$0 sps:$4 sm:$0xff]   ;;  %748 = vrot.lane.b32.xlu0 %v1772_v32, %s1899_s21  ;;  %s1905_s21 = smov 104  }
 0x24a   : > { %630 = vrot.lane.b32.xlu1 %v2084_v33, %s1900_s20  ;;  %v2087_v34 = vld [vmem:[#allocation2] ss:$0 sps:$4 sm:$0xff]   ;;  %s1910_s20 = smov 8  }
 0x24b   : > { %v2090_v35 = vld [vmem:[#allocation2] ss:$0 sps:$4 sm:$0xff]  }
 0x24c   : > { %v1776_v36 = vld [vmem:[#allocation2] ss:$0 sps:$4 sm:$0xff]  }
 0x24d   : > { %v2093_v37 = vld [vmem:[#allocation2] ss:$0 sps:$4 sm:$0xff]  }
 0x24e   : > { %753 = vrot.lane.b32.xlu1 %v2087_v34, %s1901_s22  ;;  %v1778_v38 = vld [vmem:[#allocation2] ss:$0 sps:$4 sm:$0xff]   ;;  %s1567_s22 = sshll.u32 %s1887_s16, 7 }
 0x24f   : > { %v619_v44 = vld [vmem:[#allocation2] sm:$0xf]  ;;  %s2231_s2 = scalar_lea.hbm %s2293_s14, %s1567_s22 }
 0x252   : > { %880 = vrot.lane.b32.xlu1 %v2090_v35, %s1902_s24  ;;  %s490_s24 = scalar_lea.vmem %s2305_s1, %s2048_s27  ;;  %s1906_s27 = smov 64  }
 0x253   : > { %v609_v52 = vld [vmem:[%s490_s24] sm:$0x1] }
 0x254   : > { %vm610_vm6 = vcmp.eq.s32.totalorder %v609_v52, 0 }
 0x255   : > { %v611_v55 = vsel %vm610_vm6, -1e+09, %v1897_v0 }
 0x256   : > { %875 = vrot.lane.b32.xlu1 %v1776_v36, %s1903_s28  ;;  %v625_v56 = vrot.slane %v611_v55, %v624_v54  ;;  %s1907_s28 = smov 56  }
 0x25a   : > { %1007 = vrot.lane.b32.xlu1 %v2093_v37, %s1904_s19  ;;  %s1908_s19 = smov 48  }
 0x25e   : > { %1002 = vrot.lane.b32.xlu1 %v1778_v38, %s1905_s21  ;;  %s1909_s21 = smov 40  }
 0x2bb   : > { %v749_v45 = vpop.permute.xlu0 %748 }
 0x2bc   : > { %v631_v39 = vpop.permute.xlu1 %630 }
 0x2bd   : > { %v637_v40 = vsel %vm632_vm5, %v631_v39, 0 }
 0x2be   : > { %1616 = vmatpush3.bf16.xpose.msra.mxu0 %v637_v40 }
 0x2bf   : > { %1621 = vmatprep.subr.bf16.mxu0 %v1897_v0 }
 0x2c0   : > { %v754_v41 = vpop.permute.xlu1 %753 }
 0x2c1   : > { %v759_v42 = vsel %vm632_vm5, %v754_v41, 0 }
 0x2c2   : > { %1628 = vmatpush3.bf16.xpose.msra.mxu1 %v759_v42 }
 0x2c3   : > { %1639 = vmatprep.subr.bf16.mxu1 %v1897_v0 }
 0x2c4   : > { %v881_v43 = vpop.permute.xlu1 %880 }
 0x2c5   : > { %1618 = vmatmul.mubr.msk.bf16.vlgmr.msra.gmra.mrb[4].mxu0 %vm632_vm5, %v619_v44  ;;  %v886_v47 = vsel %vm632_vm5, %v881_v43, 0 }
 0x2c6   : > { %1623 = vmatprep.mubr.msk.bf16.mxu0 %vm1898_vm1, %v1897_v0 }
 0x2c8   : > { %v876_v46 = vpop.permute.xlu1 %875 }
 0x2c9   : > { %1630 = vmatmul.mubr.msk.bf16.vlgmr.msra.gmra.mrb[0].mxu1 %vm632_vm5, %v749_v45 }
 0x2ca   : > { %1640 = vmatpush3.bf16.xpose.msra.mxu1 %v886_v47  ;;  %1641 = vmatprep.mubr.msk.bf16.mxu1 %vm1898_vm1, %v1897_v0 }
 0x2cb   : > { %1651 = vmatprep.subr.bf16.mxu1 %v1897_v0 }
 0x2cc   : > { %v1008_v48 = vpop.permute.xlu1 %1007 }
 0x2cd   : > { %v1013_v49 = vsel %vm632_vm5, %v1008_v48, 0 }
 0x2d0   : > { %v1003_v50 = vpop.permute.xlu1 %1002 }
 0x2d1   : > { %1642 = vmatmul.mubr.msk.bf16.vlgmr.msra.gmra.mrb[4].mxu1 %vm632_vm5, %v876_v46 }
 0x2d2   : > { %1652 = vmatpush3.bf16.xpose.msra.mxu1 %v1013_v49  ;;  %1653 = vmatprep.mubr.msk.bf16.mxu1 %vm1898_vm1, %v1897_v0 }
 0x2d3   : > { %1663 = vmatprep.subr.bf16.mxu1 %v1897_v0 }
 0x2d9   : > { %1654 = vmatmul.mubr.msk.bf16.vlgmr.msra.gmra.mrb[8].mxu1 %vm632_vm5, %v1003_v50 }
 0x2da   : > { %1667 = vmatprep.mubr.msk.bf16.mxu1 %vm1898_vm1, %v1897_v0 }
 0x398   : > { %v673_v57 = vpop.f32.mrb[4].mxu0 }
 0x399   : > { %v674_v58 = vadd.f32 %v673_v57, %v625_v56  ;;  %v1619_v59 = vpop.f32.mrb[5].mxu0 }
 0x39a   : > { %v676_v60 = vpop.f32.mrb[6].mxu0 }
 0x39b   : > { %v1620_v61 = vpop.f32.mrb[7].mxu0  ;;  %v679_v62 = vsel %vm632_vm5, %v674_v58, -inf }
 0x39c   : > { %v795_v63 = vpop.f32.mrb[0].mxu1  ;;  %680 = vmax.xlane.f32.xlu1 %v679_v62 }
 0x39d   : > { %v796_v2 = vadd.f32 %v795_v63, %v625_v56  ;;  %v1631_v3 = vpop.f32.mrb[1].mxu1 }
 0x39e   : > { %v798_v4 = vpop.f32.mrb[2].mxu1 }
 0x39f   : > { %v1632_v5 = vpop.f32.mrb[3].mxu1  ;;  %v801_v6 = vsel %vm632_vm5, %v796_v2, -inf }
 0x3a0   : > { %802 = vmax.xlane.f32.xlu0 %v801_v6 }
 0x3a4   : > { %v922_v7 = vpop.f32.mrb[4].mxu1 }
 0x3a5   : > { %v923_v8 = vadd.f32 %v922_v7, %v625_v56  ;;  %v1643_v9 = vpop.f32.mrb[5].mxu1 }
 0x3a6   : > { %v925_v10 = vpop.f32.mrb[6].mxu1 }
 0x3a7   : > { %v1644_v11 = vpop.f32.mrb[7].mxu1  ;;  %v928_v12 = vsel %vm632_vm5, %v923_v8, -inf }
 0x3a8   : > { %929 = vmax.xlane.f32.xlu1 %v928_v12  ;;  %v1779_v11 = vld [vmem:[%s2283_s4] sm:$0xff]  }
 0x3a9   : > { %1664 = vmatpush3.bf16.msra.mxu1 %v1779_v11 }
 0x3aa   : > { %1665 = vmatprep.subr.bf16.mxu1 %v1897_v0 }
 0x3ac   : > { %v1049_v13 = vpop.f32.mrb[8].mxu1 }
 0x3ad   : > { %v1050_v14 = vadd.f32 %v1049_v13, %v625_v56  ;;  %v1655_v15 = vpop.f32.mrb[9].mxu1  ;;  %v1780_v13 = vld [vmem:[%s2283_s4 + $0x8] sm:$0xff]  }
 0x3ae   : > { %v1052_v16 = vpop.f32.mrb[10].mxu1  ;;  %1666 = vmatpush3.bf16.msra.mxu1 %v1780_v13 }
 0x3af   : > { %v1656_v17 = vpop.f32.mrb[11].mxu1  ;;  %v1055_v18 = vsel %vm632_vm5, %v1050_v14, -inf  ;;  %1679 = vmatprep.subr.bf16.mxu1 %v1897_v0 }
 0x3b0   : > { %1056 = vmax.xlane.f32.xlu0 %v1055_v18 }
 0x429   : > { %v681_v19 = vpop.xlane.xlu1 %680 }
 0x42a   : > { %v682_v20 = vsub.f32 %v674_v58, %v681_v19 }
 0x42c   : > { %v683_v21 = vmul.f32 1.442695, %v682_v20 }
 0x42d   : > { %v803_v22 = vpop.xlane.xlu0 %802 }
 0x42e   : > { %1795 = vpow2.f32 %v683_v21  ;;  %v804_v23 = vsub.f32 %v796_v2, %v803_v22 }
 0x430   : > { %v805_v24 = vmul.f32 1.442695, %v804_v23 }
 0x432   : > { %1797 = vpow2.f32 %v805_v24 }
 0x435   : > { %v930_v38 = vpop.xlane.xlu1 %929 }
 0x436   : > { %v931_v39 = vsub.f32 %v923_v8, %v930_v38 }
 0x438   : > { %v1796_v25 = vpop.eup %1795  ;;  %v932_v40 = vmul.f32 1.442695, %v931_v39 }
 0x439   : > { %v685_v26 = vsel %vm632_vm5, %v1796_v25, 0.0 }
 0x43a   : > { %686 = vadd.xlane.f32.xlu1 %v685_v26 }
 0x43c   : > { %v1798_v27 = vpop.eup %1797 }
 0x43d   : > { %v1057_v28 = vpop.xlane.xlu0 %1056  ;;  %v807_v29 = vsel %vm632_vm5, %v1798_v27, 0.0 }
 0x43e   : > { %v1058_v30 = vsub.f32 %v1050_v14, %v1057_v28  ;;  %808 = vadd.xlane.f32.xlu0 %v807_v29 }
 0x440   : > { %v1059_v31 = vmul.f32 1.442695, %v1058_v30 }
 0x442   : > { %1799 = vpow2.f32 %v1059_v31 }
 0x443   : > { %1801 = vpow2.f32 %v932_v40 }
 0x44b   : > { %691 = vrot.lane.b32.xlu1 %v2084_v33, %s1906_s27 }
 0x44c   : > { %v1800_v32 = vpop.eup %1799 }
 0x44d   : > { %v1061_v36 = vsel %vm632_vm5, %v1800_v32, 0.0  ;;  %v1802_v41 = vpop.eup %1801 }
 0x44e   : > { %1062 = vadd.xlane.f32.xlu0 %v1061_v36  ;;  %v934_v42 = vsel %vm632_vm5, %v1802_v41, 0.0 }
 0x464   : > { %813 = vrot.lane.b32.xlu0 %v2087_v34, %s1907_s28 }
 0x46f   : > { %935 = vadd.xlane.f32.xlu1 %v934_v42 }
 0x480   : > { %940 = vrot.lane.b32.xlu1 %v2090_v35, %s1908_s19  ;;  %s1911_s19 = smov 16  }
 0x484   : > { %1067 = vrot.lane.b32.xlu1 %v2093_v37, %s1909_s21  ;;  %s1912_s21 = smov 24  }
 0x4c7   : > { %v687_v33 = vpop.xlane.xlu1 %686 }
 0x4c8   : > { %1803 = vrcp.f32 %v687_v33 }
 0x4cb   : > { %v692_v43 = vpop.permute.xlu1 %691  ;;  %v809_v45 = vpop.xlane.xlu0 %808 }
 0x4cc   : > { %v698_v44 = vsel %vm696_vm7, %v692_v43, 0  ;;  %1805 = vrcp.f32 %v809_v45  ;;  %v1781_v43 = vld [vmem:[%s2289_s10] sm:$0xff]  }
 0x4cd   : > { %1622 = vmatpush3.bf16.msra.mxu0 %v698_v44 }
 0x4ce   : > { %1633 = vmatprep.subr.bf16.mxu0 %v1897_v0 }
 0x4d2   : > { %v1804_v34 = vpop.eup %1803 }
 0x4d3   : > { %v689_v46 = vmul.f32 %v1804_v34, %v1796_v25 }
 0x4d5   : > { %v690_v47 = vpack.c.bf16 %v689_v46, %v689_v46 }
 0x4d6   : > { %v1806_v35 = vpop.eup %1805 }
 0x4d7   : > { %1624 = vmatmul.mubr.msk.bf16.vlgmr.msra.gmra.mrb[8].mxu0 %vm632_vm5, %v690_v47  ;;  %v811_v48 = vmul.f32 %v1806_v35, %v1798_v27  ;;  %v1547_v27 = vld [vmem:[%s2284_s5] ss:$0 sm:$0xff] }
 0x4d8   : > { %1635 = vmatprep.mubr.msk.bf16.mxu0 %vm1898_vm1, %v1897_v0 }
 0x4d9   : > { %v812_v51 = vpack.c.bf16 %v811_v48, %v811_v48 }
 0x4db   : > { %v1063_v37 = vpop.xlane.xlu0 %1062 }
 0x4df   : > { %v814_v49 = vpop.permute.xlu0 %813 }
 0x4e0   : > { %v819_v50 = vsel %vm696_vm7, %v814_v49, 0  ;;  %v1551_v49 = vld [vmem:[%s2287_s8] ss:$0 sm:$0xff] }
 0x4e1   : > { %1634 = vmatpush3.bf16.msra.mxu0 %v819_v50 }
 0x4e2   : > { %1645 = vmatprep.subr.bf16.mxu0 %v1897_v0 }
 0x4e4   : > { %1636 = vmatmul.mubr.msk.bf16.vlgmr.msra.gmra.mrb[12].mxu0 %vm632_vm5, %v812_v51 }
 0x4e5   : > { %1647 = vmatprep.mubr.msk.bf16.mxu0 %vm1898_vm1, %v1897_v0 }
 0x4fc   : > { %v936_v52 = vpop.xlane.xlu1 %935 }
 0x4fd   : > { %1807 = vrcp.f32 %v936_v52  ;;  %v1552_v52 = vld [vmem:[%s2288_s9] ss:$0 sm:$0xff] }
 0x4fe   : > { %1809 = vrcp.f32 %v1063_v37 }
 0x500   : > { %v941_v53 = vpop.permute.xlu1 %940 }
 0x501   : > { %v946_v54 = vsel %vm696_vm7, %v941_v53, 0 }
 0x502   : > { %1646 = vmatpush3.bf16.msra.mxu0 %v946_v54 }
 0x503   : > { %1657 = vmatprep.subr.bf16.mxu0 %v1897_v0 }
 0x504   : > { %v1068_v57 = vpop.permute.xlu1 %1067 }
 0x505   : > { %v1073_v60 = vsel %vm696_vm7, %v1068_v57, 0  ;;  %v1784_v57 = vld [vmem:[%s2291_s12 + $0x8] sm:$0xff]  }
 0x507   : > { %v1808_v55 = vpop.eup %1807 }
 0x508   : > { %v938_v56 = vmul.f32 %v1808_v55, %v1802_v41  ;;  %v1810_v59 = vpop.eup %1809 }
 0x509   : > { %v1065_v61 = vmul.f32 %v1810_v59, %v1800_v32  ;;  %v1786_v59 = vld [vmem:[%s2291_s12 + $0x18] sm:$0xff]  }
 0x50a   : > { %v939_v58 = vpack.c.bf16 %v938_v56, %v938_v56  ;;  %v1783_v56 = vld [vmem:[%s2291_s12] sm:$0xff]  }
 0x50b   : > { %v1066_v62 = vpack.c.bf16 %v1065_v61, %v1065_v61  ;;  %v1788_v61 = vld [vmem:[%s2291_s12 + $0x28] sm:$0xff]  }
 0x50c   : > { %1648 = vmatmul.mubr.msk.bf16.vlgmr.msra.gmra.mrb[16].mxu0 %vm632_vm5, %v939_v58  ;;  %v1785_v58 = vld [vmem:[%s2291_s12 + $0x10] sm:$0xff]  }
 0x50d   : > { %1658 = vmatpush3.bf16.msra.mxu0 %v1073_v60  ;;  %1659 = vmatprep.mubr.msk.bf16.mxu0 %vm1898_vm1, %v1897_v0  ;;  %v1787_v60 = vld [vmem:[%s2291_s12 + $0x20] sm:$0xff]  }
 0x50e   : > { %1671 = vmatprep.subr.bf16.mxu0 %v1897_v0 }
 0x514   : > { %1660 = vmatmul.mubr.msk.bf16.vlgmr.msra.gmra.mrb[20].mxu0 %vm632_vm5, %v1066_v62  ;;  %v1789_v62 = vld [vmem:[%s2291_s12 + $0x30] sm:$0xff]  }
 0x515   : > { %1675 = vmatprep.mubr.msk.bf16.mxu0 %vm1898_vm1, %v1897_v0  ;;  %1672 = vmatpush3.bf16.msra.mxu0 %v1781_v43 }
 0x516   : > { %1673 = vmatprep.subr.bf16.mxu0 %v1897_v0 }
 0x5aa   : > { %v734_v63 = vpop.f32.mrb[8].mxu0 }
 0x5ab   : > { %v740_v2 = vpack.c.bf16 %v734_v63, %v734_v63  ;;  %v1625_v3 = vpop.f32.mrb[9].mxu0  ;;  %v1790_v63 = vld [vmem:[%s2291_s12 + $0x38] sm:$0xff]  }
 0x5ac   : > { %v737_v4 = vpop.f32.mrb[10].mxu0 }
 0x5ad   : > { %742 = vst.msk [vmem:[#allocation3] sm:$0xf] %vm741_vm8, %v740_v2  ;;  %v1626_v5 = vpop.f32.mrb[11].mxu0  ;;  %v1553_v2 = vld [vmem:[%s2290_s11] ss:$0 sm:$0xff] }
 0x5b7   : > { %v855_v6 = vpop.f32.mrb[12].mxu0 }
 0x5b8   : > { %v1570_v7 = vpack.c.bf16 %v855_v6, %v855_v6  ;;  %v1637_v8 = vpop.f32.mrb[13].mxu0 }
 0x5b9   : > { %v858_v9 = vpop.f32.mrb[14].mxu0 }
 0x5ba   : > { %865 = vrot.lane.b32.xlu0 %v1570_v7, %s1910_s20  ;;  %v1638_v10 = vpop.f32.mrb[15].mxu0  ;;  %s1913_s20 = smov [#allocation4]  }
 0x5bb   : > { %s1821_s0 = sshll.u32 %s1913_s20, 4  ;;  %s1822_s0 = int_to_ptr.vmem [resolvable:$false] %s1821_s0 }
 0x5bc   : > { %s1823_s3 = scalar_lea.vmem %s1822_s0, 256 }
 0x5df   : > { %v982_v12 = vpop.f32.mrb[16].mxu0 }
 0x5e0   : > { %v1571_v14 = vpack.c.bf16 %v982_v12, %v982_v12  ;;  %v1649_v15 = vpop.f32.mrb[17].mxu0 }
 0x5e1   : > { %v985_v16 = vpop.f32.mrb[18].mxu0 }
 0x5e2   : > { %992 = vrot.lane.b32.xlu1 %v1571_v14, %s1911_s19  ;;  %v1650_v17 = vpop.f32.mrb[19].mxu0  ;;  %s481_s19 = sand.u32 1, %s1879_s30  }
 0x5e3   : > { %v1557_v17 = vld [vmem:[%s2292_s13] ss:$0 sm:$0xff]  ;;  %s1421_s16 = scalar_lea.sflag [#allocation5], %s481_s19 }
 0x5e7   : > { %v1109_v18 = vpop.f32.mrb[20].mxu0 }
 0x5e8   : > { %v1572_v19 = vpack.c.bf16 %v1109_v18, %v1109_v18  ;;  %v1661_v20 = vpop.f32.mrb[21].mxu0 }
 0x5e9   : > { %v1112_v21 = vpop.f32.mrb[22].mxu0 }
 0x5ea   : > { %1119 = vrot.lane.b32.xlu0 %v1572_v19, %s1912_s21  ;;  %v1662_v22 = vpop.f32.mrb[23].mxu0  ;;  %s1521_s21 = sshll.u32 %s481_s19, 3 }
 0x5eb   : > { %s483_s24 = scalar_lea.vmem [#allocation4], %s1521_s21 }
 0x5ec   : > { %s1435_s27 = sshll.u32 %s483_s24, 4  ;;  %s2233_s27 = int_to_ptr.vmem [resolvable:$true] %s1435_s27 }
 0x5ed   : > { %s1817_s21 = scalar_lea.vmem %s2233_s27, 128  ;;  %p1824_p1 = scmp.lt.s32.totalorder %s2233_s27, %s1822_s0 }
 0x5ee   : > { %p1818_p12 = scmp.ne.s32.totalorder %s2233_s27, %s1817_s21  ;;  %p1825_p2 = scmp.lt.s32.totalorder %s1823_s3, %s1817_s21 }
 0x5f0   : > { %p1819_p13 = pnand %p1818_p12, %p2029_p4  ;;  %p1826_p3 = por %p1825_p2, %p1824_p1 }
 0x5f2   : > { %p1820_p0 = pneg %p1819_p13 }
 0x5f4   : > { %p1827_p5 = pnand %p1826_p3, %p1820_p0 }
 0x62c   : > { %v866_v23 = vpop.permute.xlu0 %865 }
 0x62d   : > { %869 = vst.msk [vmem:[#allocation3] sm:$0xf] %vm868_vm9, %v866_v23 }
 0x654   : > { %v993_v24 = vpop.permute.xlu1 %992 }
 0x655   : > { %996 = vst.msk [vmem:[#allocation3] sm:$0xf] %vm995_vm10, %v993_v24 }
 0x65c   : > { %v1120_v25 = vpop.permute.xlu0 %1119 }
 0x65d   : > { %1123 = vst.msk [vmem:[#allocation3] sm:$0xf] %vm1122_vm11, %v1120_v25 }
 0x664   : > { %v1124_v26 = vld [vmem:[#allocation3] sm:$0xf] }
 0x665   : > { %1668 = vmatmul.mubr.msk.bf16.vlgmr.msra.gmra.mrb[12].mxu1 %vm503_vm0, %v1124_v26 }
 0x666   : > { %1695 = vmatprep.mubr.msk.bf16.mxu1 %vm1898_vm1, %v1897_v0  ;;  %1680 = vmatpush3.bf16.msra.mxu1 %v1783_v56 }
 0x667   : > { %1681 = vmatprep.subr.bf16.mxu1 %v1897_v0 }
 0x66a   : > { %1682 = vmatpush3.bf16.msra.mxu1 %v1784_v57 }
 0x66b   : > { %1683 = vmatprep.subr.bf16.mxu1 %v1897_v0 }
 0x66e   : > { %1684 = vmatpush3.bf16.msra.mxu1 %v1785_v58 }
 0x66f   : > { %1685 = vmatprep.subr.bf16.mxu1 %v1897_v0 }
 0x672   : > { %1686 = vmatpush3.bf16.msra.mxu1 %v1786_v59 }
 0x673   : > { %1687 = vmatprep.subr.bf16.mxu1 %v1897_v0 }
 0x676   : > { %1688 = vmatpush3.bf16.msra.mxu1 %v1787_v60 }
 0x677   : > { %1689 = vmatprep.subr.bf16.mxu1 %v1897_v0 }
 0x67a   : > { %1690 = vmatpush3.bf16.msra.mxu1 %v1788_v61 }
 0x67b   : > { %1691 = vmatprep.subr.bf16.mxu1 %v1897_v0 }
 0x67e   : > { %1692 = vmatpush3.bf16.msra.mxu1 %v1789_v62 }
 0x67f   : > { %1693 = vmatprep.subr.bf16.mxu1 %v1897_v0 }
 0x682   : > { %1694 = vmatpush3.bf16.msra.mxu1 %v1790_v63 }
 0x738   : > { %v1186_v28 = vpop.f32.mrb[12].mxu1 }
 0x739   : > { %v1187_v29 = vadd.f32 %v1547_v27, %v1186_v28  ;;  %v1669_v30 = vpop.f32.mrb[13].mxu1 }
 0x73a   : > { %v1189_v31 = vpop.f32.mrb[14].mxu1 }
 0x73b   : > { %v2168_v32 = vadd.f32 %v1187_v29, %v2054_v1  ;;  %v1670_v36 = vpop.f32.mrb[15].mxu1  ;;  %v1782_v1 = vld [vmem:[%s2289_s10 + $0x8] sm:$0xff]  }
 0x73c   : > { %1674 = vmatpush3.bf16.msra.mxu0 %v1782_v1 }
 0x73d   : > { %v1195_v38 = vsel %vm503_vm0, %v2168_v32, 0.0 }
 0x73e   : > { %1196 = vadd.xlane.f32.xlu1 %v1195_v38 }
 0x7cb   : > { %v1197_v39 = vpop.xlane.xlu1 %1196 }
 0x7cc   : > { %v1199_v40 = vmul.f32 0.03125, %v1197_v39 }
 0x7ce   : > { %v1200_v41 = vsub.f32 %v2168_v32, %v1199_v40 }
 0x7d0   : > { %v1201_v42 = vmul.f32 %v1200_v41, %v1200_v41  ;;  %v1221_v50 = vmul.f32 %v1551_v49, %v1200_v41 }
 0x7d2   : > { %v1202_v33 = vsel %vm503_vm0, %v1201_v42, 0.0 }
 0x7d3   : > { %1203 = vadd.xlane.f32.xlu0 %v1202_v33 }
 0x860   : > { %v1204_v44 = vpop.xlane.xlu0 %1203 }
 0x861   : > { %v1205_v45 = vmul.f32 0.032258064, %v1204_v44 }
 0x863   : > { %1811 = vrsqrt.f32 %v1205_v45  ;;  %vm1208_vm12 = vcmp.eq.f32.partialorder %v1205_v45, inf  ;;  %v1211_v47 = vand.u32 2147483648, %v1205_v45  ;;  %vm1210_vm13 = vcmp.eq.f32.partialorder %v1205_v45, 0.0 }
 0x86d   : > { %v1812_v34 = vpop.eup %1811 }
 0x86e   : > { %v1207_v46 = vmul.f32 %v1812_v34, %v1205_v45 }
 0x870   : > { %v1209_v35 = vsel %vm1208_vm12, %v1205_v45, %v1207_v46 }
 0x871   : > { %v1212_v37 = vsel %vm1210_vm13, %v1211_v47, %v1209_v35 }
 0x872   : > { %v1213_v48 = vadd.f32 1e-06, %v1212_v37 }
 0x874   : > { %1813 = vrcp.f32 %v1213_v48 }
 0x87e   : > { %v1814_v51 = vpop.eup %1813 }
 0x87f   : > { %v1222_v53 = vmul.f32 %v1814_v51, %v1221_v50 }
 0x881   : > { %v1229_v54 = vadd.f32 %v1552_v52, %v1222_v53 }
 0x883   : > { %v1230_v55 = vpack.c.bf16 %v1229_v54, %v1229_v54 }
 0x885   : > { %1676 = vmatmul.mubr.msk.bf16.vlgmr.msra.gmra.mrb[24].mxu0 %vm503_vm0, %v1230_v55 }
 0x958   : > { %v1291_v3 = vpop.f32.mrb[24].mxu0 }
 0x959   : > { %v1292_v4 = vadd.f32 %v1553_v2, %v1291_v3  ;;  %v1677_v5 = vpop.f32.mrb[25].mxu0 }
 0x95a   : > { %v1294_v6 = vpop.f32.mrb[26].mxu0 }
 0x95b   : > { %v1297_v7 = vpack.c.bf16 %v1292_v4, %v1292_v4  ;;  %v1678_v8 = vpop.f32.mrb[27].mxu0 }
 0x95d   : > { %v1299_v9 = vmul.bf16 1027030327, %v1297_v7  ;;  %v1298_v14 = vmul.bf16 1056980736, %v1297_v7 }
 0x95f   : > { %v1300_v10 = vmul.bf16 %v1299_v9, %v1297_v7 }
 0x961   : > { %v1301_v11 = vmul.bf16 %v1300_v10, %v1297_v7 }
 0x963   : > { %v1302_v12 = vadd.bf16 %v1301_v11, %v1297_v7 }
 0x965   : > { %v1303_v13 = vmul.bf16 1061961548, %v1302_v12 }
 0x967   : > { %1815 = vtanh.bf16 %v1303_v13 }
 0x972   : > { %v1816_v0 = vpop.eup %1815 }
 0x973   : > { %v1305_v15 = vadd.bf16 1065369472, %v1816_v0 }
 0x975   : > { %v1306_v16 = vmul.bf16 %v1305_v15, %v1298_v14 }
 0x977   : > { %1696 = vmatmul.mubr.bf16.vlgmr.msra.gmra.mrb[16].mxu1 %v1306_v16 }
 0xa4a   : > { %v1412_v18 = vpop.f32.mrb[16].mxu1 }
 0xa4b   : > { %v1413_v19 = vadd.f32 %v1557_v17, %v1412_v18  ;;  %v1697_v20 = vpop.f32.mrb[17].mxu1 }
 0xa4c   : > { %v1415_v21 = vpop.f32.mrb[18].mxu1 }
 0xa4d   : > { %v1418_v22 = vadd.f32 %v1413_v19, %v2168_v32  ;;  %v1698_v23 = vpop.f32.mrb[19].mxu1 }
 0xa4f   : > { %1419 = vst.msk [vmem:[%s483_s24] sm:$0xff] %vm503_vm0, %v1418_v22 }
 0xa50   : > { %1830 = shalt.err (!%p1827_p5)
}
 0xa51   : > { %s1831_s1 = scalar_lea.hbm %s2231_s2, 128  ;;  %s1835_s24 = scalar_lea.hbm %s2293_s14, 256 }
 0xa52   : > { %p1832_p6 = scmp.ne.s32.totalorder %s2231_s2, %s1831_s1  ;;  %p1836_p10 = scmp.lt.u32.totalorder %s2231_s2, %s2293_s14 }
 0xa53   : > { %p1837_p11 = scmp.lt.u32.totalorder %s1835_s24, %s1831_s1  ;;  %p1839_p13 = scmp.lt.u32.totalorder %s1831_s1, %s2231_s2 }
 0xa54   : > { %p1833_p7 = pnand %p1832_p6, %p2029_p4 }
 0xa55   : > { %p1838_p12 = por %p1837_p11, %p1836_p10 }
 0xa56   : > { %p1834_p9 = pneg %p1833_p7 }
 0xa57   : > { %p1840_p0 = por %p1839_p13, %p1838_p12 }
 0xa59   : > { %p1841_p1 = pnand %p1840_p0, %p1834_p9 }
 0xa5b   : > { %1844 = shalt.err (!%p1841_p1)
}
 0xa5c   : > { %1699 = dma.vmem_to_hbm [thread:$0]  (%p2029_p4), %s2233_s27, 128, %s2231_s2, %s1421_s16  }
 0xa5d PF: > { %p1705_p2 = scmp.ge.s32.totalorder %s1895_s18, 2  ;;  %s1447_s3 = sand.u32 1, %s1875_s29  }
 0xa5e   : > { %s1448_s21 = scalar_lea.sflag [#allocation5], %s1447_s3 }
 0xa5f   : > { %p1702_p3 = pnand %p1705_p2, %p2036_p8 }
 0xa61   : > { %1870 = dma.done.wait (!%p1702_p3), %s1448_s21, 128  }
 0xa62   : > { %1872 = vsyncadd (!%p1702_p3), %s1448_s21, 4294967168  ;;  %s27_s18 = sadd.s32 1, %s1895_s18   ;;  %s2306_s23 = sld [smem:[#allocation7_spill]] }
 0xa63   : > { %p24_p5 = scmp.ge.s32.totalorder %s27_s18, 4   ;;  %s2307_s29 = smov %s1879_s30 }
 0xa64   : > { %s2308_s30 = smov %s1883_s15  ;;  %s2309_s15 = smov %s2042_s26 }
 0xa65   : > { %s2310_s16 = smov %s1891_s17  ;;  %26 = sbr.rel (!%p24_p5) target bundleno = 9 (0x9), region = 120 }
 0xa68   : > { %s2311_s17 = smov %s2306_s23 }
 0xa6c   :  { %1453 = vsyncpa [#allocation5], 1 }
 0xa6d   :  { %1455 = vsyncpa [#allocation5 + $0x1], 1 }

</bundles_post_ra>
